<compile_context>
chip_gen: v6e
topology: v6e:2x2x1
jax: 0.10.0
libtpu: 0.0.40
codegen_flags: <defaults>
</compile_context>

<pallas_src>
import functools

import jax
import jax.numpy as jnp
from jax import lax
from jax.experimental import pallas as pl
from jax.experimental.pallas import tpu as pltpu

_DX_SHIFTS = (-2, -1, 1, 2)   # nonzero column offsets used by conv2 / conv3


# ----------------------------- Pallas kernel -------------------------------


def msag_kernel(x_tile_ref, x_top_ref, x_bot_ref, dxmask_ref,
                w1_ref, w2_ref, w3_ref, ball_ref, wvt_ref, bv_ref,
                out_ref, xrows_ref, shift_ref, col_ref, *, TH, W, C, CP):
    # x_tile_ref: (1, C, TH*W)   current row tile, channels-first, lane-dense
    # x_top_ref:  (1, C, 8*W)    8-row block just above the tile (clamped)
    # x_bot_ref:  (1, C, 8*W)    8-row block just below the tile (clamped)
    # dxmask_ref: (4, (TH+4)*W)  column-validity masks for dx in _DX_SHIFTS
    # w1_ref:     (C, CP)        1x1 conv weight (BN folded), channel-padded
    # w2_ref:     (C, 9*CP)      3x3 conv weight, one CP-slab per tap
    # w3_ref:     (C, 9*CP)      3x3 dilated(2) conv weight, one CP-slab per tap
    # ball_ref:   (3C, 1)        fused conv biases (conv1|conv2|conv3)
    # wvt_ref:    (C, 3C)        1x1 vote conv weight (BN folded)
    # bv_ref:     (C, 1)         vote bias
    # scratch:    xrows (CP, (TH+4)*W), shift (CP, (TH+4)*W), col (18*CP, TH*W)
    h = pl.program_id(1)
    nh = pl.num_programs(1)
    L = (TH + 4) * W            # staged plane: TH rows + 2-row halo each side

    # ---- stage the (TH+4)-row plane (pitch W, no column padding) -----------
    if CP > C:                  # channel-pad rows are never overwritten
        xrows_ref[C:CP, :] = jnp.zeros((CP - C, L), jnp.float32)
    xrows_ref[0:C, 2 * W:(2 + TH) * W] = x_tile_ref[0]

    @pl.when(h > 0)             # rows r0-2, r0-1 = last 2 rows of block above
    def _():
        xrows_ref[0:C, 0:2 * W] = x_top_ref[0, :, 6 * W:8 * W]

    @pl.when(h == 0)            # above the image: zeros
    def _():
        xrows_ref[0:C, 0:2 * W] = jnp.zeros((C, 2 * W), jnp.float32)

    @pl.when(h < nh - 1)        # rows r0+TH, r0+TH+1 = first 2 rows of block below
    def _():
        xrows_ref[0:C, (2 + TH) * W:(4 + TH) * W] = x_bot_ref[0, :, 0:2 * W]

    @pl.when(h == nh - 1)       # below the image: zeros
    def _():
        xrows_ref[0:C, (2 + TH) * W:(4 + TH) * W] = jnp.zeros((C, 2 * W), jnp.float32)

    # ---- im2col in stripped (pitch-W) layout --------------------------------
    # col rows [k*CP, (k+1)*CP)      = conv2 tap k, (dy, dx) = (k//3 - 1, k%3 - 1)
    # col rows [(9+k)*CP, (10+k)*CP) = conv3 tap k, (dy, dx) = (2*(k//3-1), 2*(k%3-1))
    def dy_slab(ref, dy):       # plane rows 2+dy .. 2+dy+TH-1 (lane-aligned slab)
        return ref[:, (2 + dy) * W:(2 + dy + TH) * W]

    # dx == 0 taps: straight slab copies from the staged plane.
    for dy in (-1, 0, 1):
        k = (dy + 1) * 3 + 1
        col_ref[k * CP:(k + 1) * CP, :] = dy_slab(xrows_ref, dy)
    for dy in (-2, 0, 2):
        k = (dy // 2 + 1) * 3 + 1
        col_ref[(9 + k) * CP:(10 + k) * CP, :] = dy_slab(xrows_ref, dy)

    # dx != 0 taps: one lane roll of the whole plane per dx (XLU work), with a
    # precomputed mask zeroing the columns that fell off the image edge; the
    # dy taps then become multiple-of-W slab copies.
    for j, dx in enumerate(_DX_SHIFTS):
        shift_ref[...] = (jnp.roll(xrows_ref[...], -dx, axis=1)
                          * dxmask_ref[j:j + 1, :])
        if abs(dx) == 1:                          # conv2 taps
            for dy in (-1, 0, 1):
                k = (dy + 1) * 3 + (dx + 1)
                col_ref[k * CP:(k + 1) * CP, :] = dy_slab(shift_ref, dy)
        else:                                     # conv3 taps (dilation 2)
            for dy in (-2, 0, 2):
                k = (dy // 2 + 1) * 3 + (dx // 2 + 1)
                col_ref[(9 + k) * CP:(10 + k) * CP, :] = dy_slab(shift_ref, dy)

    # ---- the three convs (+ folded BN bias) as split MXU matmuls -----------
    center = col_ref[4 * CP:5 * CP, :]            # tap (dy, dx) = (0, 0)
    x1 = jnp.dot(w1_ref[...], center, preferred_element_type=jnp.float32)
    x2 = jnp.dot(w2_ref[...], col_ref[0:9 * CP, :],
                 preferred_element_type=jnp.float32)
    x3 = jnp.dot(w3_ref[...], col_ref[9 * CP:18 * CP, :],
                 preferred_element_type=jnp.float32)
    r1 = jnp.maximum(x1 + ball_ref[0:C, :], 0.0)
    r2 = jnp.maximum(x2 + ball_ref[C:2 * C, :], 0.0)
    r3 = jnp.maximum(x3 + ball_ref[2 * C:3 * C, :], 0.0)

    # ---- 1x1 vote conv (+ folded BN), sigmoid gate, fused output ------------
    z = (jnp.dot(wvt_ref[:, 0:C], r1, preferred_element_type=jnp.float32)
         + jnp.dot(wvt_ref[:, C:2 * C], r2, preferred_element_type=jnp.float32)
         + jnp.dot(wvt_ref[:, 2 * C:3 * C], r3, preferred_element_type=jnp.float32)
         + bv_ref[...])
    gate = 1.5 + 0.5 * jnp.tanh(0.5 * z)          # = 1 + sigmoid(z), one EUP push
    out_ref[0] = x_tile_ref[0] * gate             # x + x * sigmoid(z), dense store


# ------------------------------- wrapper ------------------------------------


def _vmem_limit_bytes():
    """Generation-aware scoped-VMEM cap with headroom (v7x: 64 MiB physical)."""
    try:
        cap = pltpu.get_tpu_info().vmem_capacity_bytes
    except Exception:
        cap = 64 * 1024 * 1024
    return int(min(cap - 16 * 1024 * 1024, 100 * 1024 * 1024))


def _pick_tile_h(H, W, CP, budget_bytes=6 * 1024 * 1024):
    """Largest multiple-of-8 divisor of H whose im2col buffer fits the budget."""
    best = None
    th = 8
    while th <= H:
        if H % th == 0 and 18 * CP * th * W * 4 <= budget_bytes:
            best = th
        th += 8
    if best is None:
        best = 8 if H % 8 == 0 else H
    return best


def msag_pallas(x_nchw, params, *, tile_h=None):
    """x_nchw: (N, C, H, W) float32 -> (N, C, H, W) float32 (torch layout)."""
    N, C, H, W = x_nchw.shape
    CP = params["CP"]
    assert H % 8 == 0, "H must be a multiple of 8 (row-tile / halo granularity)"
    assert W % 16 == 0, "W must be a multiple of 16 (lane-aligned 8-row halo blocks)"
    TH = tile_h if tile_h is not None else _pick_tile_h(H, W, CP)
    assert TH % 8 == 0 and H % TH == 0, "tile_h must be a multiple of 8 dividing H"
    NH = H // TH
    L = (TH + 4) * W
    th8 = TH // 8
    nb8 = H // 8                                    # number of 8-row blocks in H

    x_flat = x_nchw.reshape(N, C, H * W)            # contiguous minor-dim merge

    # Column-validity masks for the nonzero dx shifts (host-built, tiny).
    lane_col = jnp.arange(L, dtype=jnp.int32) % W
    dxmask = jnp.stack(
        [((lane_col + dx >= 0) & (lane_col + dx < W)).astype(jnp.float32)
         for dx in _DX_SHIFTS])                     # (4, L)

    kernel = functools.partial(msag_kernel, TH=TH, W=W, C=C, CP=CP)
    const = lambda n, h: (0, 0)

    out_flat = pl.pallas_call(
        kernel,
        out_shape=jax.ShapeDtypeStruct((N, C, H * W), jnp.float32),
        grid=(N, NH),
        in_specs=[
            pl.BlockSpec((1, C, TH * W), lambda n, h: (n, 0, h)),        # tile rows
            pl.BlockSpec((1, C, 8 * W),
                         lambda n, h: (n, 0, jnp.maximum(h * th8 - 1, 0))),       # block above
            pl.BlockSpec((1, C, 8 * W),
                         lambda n, h: (n, 0, jnp.minimum((h + 1) * th8, nb8 - 1))),  # block below
            pl.BlockSpec((4, L), const),            # dx column masks
            pl.BlockSpec((C, CP), const),           # conv1 weight (BN folded)
            pl.BlockSpec((C, 9 * CP), const),       # conv2 weight
            pl.BlockSpec((C, 9 * CP), const),       # conv3 weight
            pl.BlockSpec((3 * C, 1), const),        # conv biases
            pl.BlockSpec((C, 3 * C), const),        # vote weight
            pl.BlockSpec((C, 1), const),            # vote bias
        ],
        out_specs=pl.BlockSpec((1, C, TH * W), lambda n, h: (n, 0, h)),
        scratch_shapes=[
            pltpu.VMEM((CP, L), jnp.float32),           # staged row plane
            pltpu.VMEM((CP, L), jnp.float32),           # dx-shifted plane
            pltpu.VMEM((18 * CP, TH * W), jnp.float32),  # im2col (stripped layout)
        ],
        compiler_params=pltpu.CompilerParams(
            dimension_semantics=("parallel", "parallel"),
            vmem_limit_bytes=_vmem_limit_bytes(),
        ),
    )(x_flat, x_flat, x_flat, dxmask,
      params["k_w1"], params["k_w2"], params["k_w3"],
      params["k_ball"], params["k_wvt"], params["k_bv"])
    return out_flat.reshape(N, C, H, W)


# ------------------------- parameter construction --------------------------


def init_params(channel, key):
    """Deterministic synthetic parameters matching MSAG.__init__ shapes."""
    C = channel
    ks = jax.random.split(key, 12)
    it = iter(ks)

    def nrm(k, shape, s=0.2):
        return s * jax.random.normal(k, shape, jnp.float32)

    def bn(k):
        kg, kb, km, kv = jax.random.split(k, 4)
        gamma = 1.0 + 0.1 * jax.random.normal(kg, (C,), jnp.float32)
        beta = 0.1 * jax.random.normal(kb, (C,), jnp.float32)
        mean = 0.1 * jax.random.normal(km, (C,), jnp.float32)
        var = 0.5 + jnp.abs(jax.random.normal(kv, (C,), jnp.float32))
        return gamma, beta, mean, var

    p = {}
    # torch-layout conv weights (OIHW) + biases
    p["w1"] = nrm(next(it), (C, C, 1, 1)); p["b1"] = nrm(next(it), (C,))
    p["w2"] = nrm(next(it), (C, C, 3, 3)); p["b2"] = nrm(next(it), (C,))
    p["w3"] = nrm(next(it), (C, C, 3, 3)); p["b3"] = nrm(next(it), (C,))
    p["wv"] = nrm(next(it), (C, 3 * C, 1, 1)); p["bv"] = nrm(next(it), (C,))
    p["bn1"] = bn(next(it)); p["bn2"] = bn(next(it))
    p["bn3"] = bn(next(it)); p["bnv"] = bn(next(it))

    # ---- fold BN (eval mode, running stats) into conv weights/biases -------
    eps = 1e-5

    def fold(w_oihw, b, bn_params):
        gamma, beta, mean, var = bn_params
        s = gamma / jnp.sqrt(var + eps)                 # per output channel
        return w_oihw * s[:, None, None, None], (b - mean) * s + beta

    w1f, b1f = fold(p["w1"], p["b1"], p["bn1"])
    w2f, b2f = fold(p["w2"], p["b2"], p["bn2"])
    w3f, b3f = fold(p["w3"], p["b3"], p["bn3"])
    wvf, bvf = fold(p["wv"], p["bv"], p["bnv"])

    # ---- pack per-conv weights with CP-aligned tap slabs --------------------
    # im2col row layout: tap k occupies rows [k*CP, k*CP + C) (rows C..CP-1 are
    # the zero channel padding); conv2 taps k = ky*3 + kx, conv3 likewise.
    CP = ((C + 7) // 8) * 8

    def pack_taps(w_oihw):                     # (C, C, 3, 3) -> (C, 9*CP)
        w = jnp.zeros((C, 9 * CP), jnp.float32)
        for k in range(9):
            ky, kx = divmod(k, 3)
            w = w.at[:, k * CP:k * CP + C].set(w_oihw[:, :, ky, kx])
        return w

    p["CP"] = CP
    p["k_w1"] = jnp.zeros((C, CP), jnp.float32).at[:, 0:C].set(w1f[:, :, 0, 0])
    p["k_w2"] = pack_taps(w2f)
    p["k_w3"] = pack_taps(w3f)
    p["k_ball"] = jnp.concatenate([b1f, b2f, b3f]).reshape(3 * C, 1)
    p["k_wvt"] = wvf[:, :, 0, 0]                               # (C, 3C)
    p["k_bv"] = bvf.reshape(C, 1)
    return p


# ------------------------- pure-JAX reference (NCHW) ------------------------


def _bn_eval(x, bn_params, eps=1e-5):
    gamma, beta, mean, var = bn_params
    s = gamma / jnp.sqrt(var + eps)
    return x * s[None, :, None, None] + (beta - mean * s)[None, :, None, None]


def msag_reference(x_nchw, p):
    def conv(x, w, b, pad, dil):
        y = lax.conv_general_dilated(
            x, w, window_strides=(1, 1),
            padding=((pad, pad), (pad, pad)),
            rhs_dilation=(dil, dil),
            dimension_numbers=("NCHW", "OIHW", "NCHW"))
        return y + b[None, :, None, None]

    x1 = _bn_eval(conv(x_nchw, p["w1"], p["b1"], 0, 1), p["bn1"])
    x2 = _bn_eval(conv(x_nchw, p["w2"], p["b2"], 1, 1), p["bn2"])
    x3 = _bn_eval(conv(x_nchw, p["w3"], p["b3"], 2, 2), p["bn3"])
    cat = jnp.maximum(jnp.concatenate([x1, x2, x3], axis=1), 0.0)
    g = _bn_eval(conv(cat, p["wv"], p["bv"], 0, 1), p["bnv"])
    g = 1.0 / (1.0 + jnp.exp(-g))
    return x_nchw + x_nchw * g


# ----------------------------------- main -----------------------------------


if __name__ == "__main__":
    N, C, H, W = 2, 4, 16, 16
    key = jax.random.PRNGKey(0)
    kx, kp = jax.random.split(key)

    x_nchw = jax.random.normal(kx, (N, C, H, W), jnp.float32)
    params = init_params(C, kp)

    # tile_h=8 -> 2 row tiles per image, so both halo branches (zero pad and
    # neighbour-tile copy) are exercised even at this toy size.
    out = msag_pallas(x_nchw, params, tile_h=8)
    out = jax.block_until_ready(out)

    # Reference check
    ref = msag_reference(x_nchw, params)
    if not jnp.allclose(out, ref, atol=1e-4, rtol=1e-4):
        max_err = float(jnp.max(jnp.abs(out - ref)))
        raise AssertionError(f"Pallas output mismatch, max abs err = {max_err}")

    print("KERNEL_OK")
</pallas_src>

<mosaic_0001>
module attributes {stable_mosaic.version = 11 : i64} {
  func.func @msag_kernel(%arg0: i32, %arg1: i32, %arg2: memref<1x4x128xf32, #tpu.memory_space<vmem>>, %arg3: memref<1x4x128xf32, #tpu.memory_space<vmem>>, %arg4: memref<1x4x128xf32, #tpu.memory_space<vmem>>, %arg5: memref<4x192xf32, #tpu.memory_space<vmem>>, %arg6: memref<4x8xf32, #tpu.memory_space<vmem>>, %arg7: memref<4x72xf32, #tpu.memory_space<vmem>>, %arg8: memref<4x72xf32, #tpu.memory_space<vmem>>, %arg9: memref<12x1xf32, #tpu.memory_space<vmem>>, %arg10: memref<4x12xf32, #tpu.memory_space<vmem>>, %arg11: memref<4x1xf32, #tpu.memory_space<vmem>>, %arg12: memref<1x4x128xf32, #tpu.memory_space<vmem>>, %arg13: memref<8x192xf32, #tpu.memory_space<vmem>>, %arg14: memref<8x192xf32, #tpu.memory_space<vmem>>, %arg15: memref<144x128xf32, #tpu.memory_space<vmem>>) attributes {dimension_semantics = [#tpu.dimension_semantics<parallel>, #tpu.dimension_semantics<parallel>], iteration_bounds = array<i64: 2, 2>, scalar_prefetch = 0 : i64, scratch_operands = 3 : i64, tpu.core_type = #tpu.core_type<tc>, window_params = [{transform_indices = @transform_0, window_bounds = array<i64: 1, 4, 128>}, {transform_indices = @transform_1, window_bounds = array<i64: 1, 4, 128>}, {transform_indices = @transform_2, window_bounds = array<i64: 1, 4, 128>}, {pipeline_mode = #tpu.pipeline_mode<synchronous>, transform_indices = @transform_3, window_bounds = array<i64: 4, 192>}, {pipeline_mode = #tpu.pipeline_mode<synchronous>, transform_indices = @transform_4, window_bounds = array<i64: 4, 8>}, {pipeline_mode = #tpu.pipeline_mode<synchronous>, transform_indices = @transform_5, window_bounds = array<i64: 4, 72>}, {pipeline_mode = #tpu.pipeline_mode<synchronous>, transform_indices = @transform_6, window_bounds = array<i64: 4, 72>}, {pipeline_mode = #tpu.pipeline_mode<synchronous>, transform_indices = @transform_7, window_bounds = array<i64: 12, 1>}, {pipeline_mode = #tpu.pipeline_mode<synchronous>, transform_indices = @transform_8, window_bounds = array<i64: 4, 12>}, {pipeline_mode = #tpu.pipeline_mode<synchronous>, transform_indices = @transform_9, window_bounds = array<i64: 4, 1>}, {transform_indices = @transform_10, window_bounds = array<i64: 1, 4, 128>}]} {
    %cst = arith.constant 0.000000e+00 : f32
    %0 = vector.broadcast %cst : f32 to vector<4x192xf32>
    %c4 = arith.constant 4 : index
    %c0 = arith.constant 0 : index
    %1 = vector.load %arg13[%c4, %c0] : memref<8x192xf32, #tpu.memory_space<vmem>>, vector<4x192xf32>
    tpu.vector_store %arg13[%c4, %c0], %0 {strides = array<i32>} : memref<8x192xf32, #tpu.memory_space<vmem>>, vector<4x192xf32>,
    %c0_0 = arith.constant 0 : index
    %c0_1 = arith.constant 0 : index
    %c0_2 = arith.constant 0 : index
    %2 = vector.load %arg2[%c0_0, %c0_1, %c0_2] : memref<1x4x128xf32, #tpu.memory_space<vmem>>, vector<1x4x128xf32>
    %3 = vector.shape_cast %2 : vector<1x4x128xf32> to vector<4x128xf32>
    %c0_3 = arith.constant 0 : index
    %c32 = arith.constant 32 : index
    %4 = vector.load %arg13[%c0_3, %c32] : memref<8x192xf32, #tpu.memory_space<vmem>>, vector<4x128xf32>
    tpu.vector_store %arg13[%c0_3, %c32], %3 {strides = array<i32>} : memref<8x192xf32, #tpu.memory_space<vmem>>, vector<4x128xf32>,
    %c0_i32 = arith.constant 0 : i32
    %5 = arith.cmpi sgt, %arg1, %c0_i32 : i32
    %6 = arith.extui %5 : i1 to i32
    %c0_i32_4 = arith.constant 0 : i32
    %7 = arith.cmpi ne, %6, %c0_i32_4 : i32
    scf.if %7 {
      %c0_131 = arith.constant 0 : index
      %c0_132 = arith.constant 0 : index
      %c96_133 = arith.constant 96 : index
      %133 = vector.load %arg3[%c0_131, %c0_132, %c96_133] : memref<1x4x128xf32, #tpu.memory_space<vmem>>, vector<1x4x32xf32>
      %134 = vector.shape_cast %133 : vector<1x4x32xf32> to vector<4x32xf32>
      %c0_134 = arith.constant 0 : index
      %c0_135 = arith.constant 0 : index
      %135 = vector.load %arg13[%c0_134, %c0_135] : memref<8x192xf32, #tpu.memory_space<vmem>>, vector<4x32xf32>
      tpu.vector_store %arg13[%c0_134, %c0_135], %134 {strides = array<i32>} : memref<8x192xf32, #tpu.memory_space<vmem>>, vector<4x32xf32>,
    } else {
    }
    %c0_i32_5 = arith.constant 0 : i32
    %8 = arith.cmpi eq, %arg1, %c0_i32_5 : i32
    %9 = arith.extui %8 : i1 to i32
    %c0_i32_6 = arith.constant 0 : i32
    %10 = arith.cmpi ne, %9, %c0_i32_6 : i32
    scf.if %10 {
      %cst_131 = arith.constant 0.000000e+00 : f32
      %133 = vector.broadcast %cst_131 : f32 to vector<4x32xf32>
      %c0_132 = arith.constant 0 : index
      %c0_133 = arith.constant 0 : index
      %134 = vector.load %arg13[%c0_132, %c0_133] : memref<8x192xf32, #tpu.memory_space<vmem>>, vector<4x32xf32>
      tpu.vector_store %arg13[%c0_132, %c0_133], %133 {strides = array<i32>} : memref<8x192xf32, #tpu.memory_space<vmem>>, vector<4x32xf32>,
    } else {
    }
    %c1_i32 = arith.constant 1 : i32
    %11 = arith.cmpi slt, %arg1, %c1_i32 : i32
    %12 = arith.extui %11 : i1 to i32
    %c0_i32_7 = arith.constant 0 : i32
    %13 = arith.cmpi ne, %12, %c0_i32_7 : i32
    scf.if %13 {
      %c0_131 = arith.constant 0 : index
      %c0_132 = arith.constant 0 : index
      %c0_133 = arith.constant 0 : index
      %133 = vector.load %arg4[%c0_131, %c0_132, %c0_133] : memref<1x4x128xf32, #tpu.memory_space<vmem>>, vector<1x4x32xf32>
      %134 = vector.shape_cast %133 : vector<1x4x32xf32> to vector<4x32xf32>
      %c0_134 = arith.constant 0 : index
      %c160 = arith.constant 160 : index
      %135 = vector.load %arg13[%c0_134, %c160] : memref<8x192xf32, #tpu.memory_space<vmem>>, vector<4x32xf32>
      tpu.vector_store %arg13[%c0_134, %c160], %134 {strides = array<i32>} : memref<8x192xf32, #tpu.memory_space<vmem>>, vector<4x32xf32>,
    } else {
    }
    %c1_i32_8 = arith.constant 1 : i32
    %14 = arith.cmpi eq, %arg1, %c1_i32_8 : i32
    %15 = arith.extui %14 : i1 to i32
    %c0_i32_9 = arith.constant 0 : i32
    %16 = arith.cmpi ne, %15, %c0_i32_9 : i32
    scf.if %16 {
      %cst_131 = arith.constant 0.000000e+00 : f32
      %133 = vector.broadcast %cst_131 : f32 to vector<4x32xf32>
      %c0_132 = arith.constant 0 : index
      %c160 = arith.constant 160 : index
      %134 = vector.load %arg13[%c0_132, %c160] : memref<8x192xf32, #tpu.memory_space<vmem>>, vector<4x32xf32>
      tpu.vector_store %arg13[%c0_132, %c160], %133 {strides = array<i32>} : memref<8x192xf32, #tpu.memory_space<vmem>>, vector<4x32xf32>,
    } else {
    }
    %c0_10 = arith.constant 0 : index
    %c16 = arith.constant 16 : index
    %17 = vector.load %arg13[%c0_10, %c16] : memref<8x192xf32, #tpu.memory_space<vmem>>, vector<8x128xf32>
    %c8 = arith.constant 8 : index
    %c0_11 = arith.constant 0 : index
    %18 = vector.load %arg15[%c8, %c0_11] : memref<144x128xf32, #tpu.memory_space<vmem>>, vector<8x128xf32>
    tpu.vector_store %arg15[%c8, %c0_11], %17 {strides = array<i32>} : memref<144x128xf32, #tpu.memory_space<vmem>>, vector<8x128xf32>,
    %c0_12 = arith.constant 0 : index
    %c32_13 = arith.constant 32 : index
    %19 = vector.load %arg13[%c0_12, %c32_13] : memref<8x192xf32, #tpu.memory_space<vmem>>, vector<8x128xf32>
    %c32_14 = arith.constant 32 : index
    %c0_15 = arith.constant 0 : index
    %20 = vector.load %arg15[%c32_14, %c0_15] : memref<144x128xf32, #tpu.memory_space<vmem>>, vector<8x128xf32>
    tpu.vector_store %arg15[%c32_14, %c0_15], %19 {strides = array<i32>} : memref<144x128xf32, #tpu.memory_space<vmem>>, vector<8x128xf32>,
    %c0_16 = arith.constant 0 : index
    %c48 = arith.constant 48 : index
    %21 = vector.load %arg13[%c0_16, %c48] : memref<8x192xf32, #tpu.memory_space<vmem>>, vector<8x128xf32>
    %c56 = arith.constant 56 : index
    %c0_17 = arith.constant 0 : index
    %22 = vector.load %arg15[%c56, %c0_17] : memref<144x128xf32, #tpu.memory_space<vmem>>, vector<8x128xf32>
    tpu.vector_store %arg15[%c56, %c0_17], %21 {strides = array<i32>} : memref<144x128xf32, #tpu.memory_space<vmem>>, vector<8x128xf32>,
    %c0_18 = arith.constant 0 : index
    %c0_19 = arith.constant 0 : index
    %23 = vector.load %arg13[%c0_18, %c0_19] : memref<8x192xf32, #tpu.memory_space<vmem>>, vector<8x128xf32>
    %c80 = arith.constant 80 : index
    %c0_20 = arith.constant 0 : index
    %24 = vector.load %arg15[%c80, %c0_20] : memref<144x128xf32, #tpu.memory_space<vmem>>, vector<8x128xf32>
    tpu.vector_store %arg15[%c80, %c0_20], %23 {strides = array<i32>} : memref<144x128xf32, #tpu.memory_space<vmem>>, vector<8x128xf32>,
    %c0_21 = arith.constant 0 : index
    %c32_22 = arith.constant 32 : index
    %25 = vector.load %arg13[%c0_21, %c32_22] : memref<8x192xf32, #tpu.memory_space<vmem>>, vector<8x128xf32>
    %c104 = arith.constant 104 : index
    %c0_23 = arith.constant 0 : index
    %26 = vector.load %arg15[%c104, %c0_23] : memref<144x128xf32, #tpu.memory_space<vmem>>, vector<8x128xf32>
    tpu.vector_store %arg15[%c104, %c0_23], %25 {strides = array<i32>} : memref<144x128xf32, #tpu.memory_space<vmem>>, vector<8x128xf32>,
    %c0_24 = arith.constant 0 : index
    %c64 = arith.constant 64 : index
    %27 = vector.load %arg13[%c0_24, %c64] : memref<8x192xf32, #tpu.memory_space<vmem>>, vector<8x128xf32>
    %c128 = arith.constant 128 : index
    %c0_25 = arith.constant 0 : index
    %28 = vector.load %arg15[%c128, %c0_25] : memref<144x128xf32, #tpu.memory_space<vmem>>, vector<8x128xf32>
    tpu.vector_store %arg15[%c128, %c0_25], %27 {strides = array<i32>} : memref<144x128xf32, #tpu.memory_space<vmem>>, vector<8x128xf32>,
    %c0_26 = arith.constant 0 : index
    %c0_27 = arith.constant 0 : index
    %29 = vector.load %arg13[%c0_26, %c0_27] : memref<8x192xf32, #tpu.memory_space<vmem>>, vector<8x192xf32>
    %30 = vector.extract_strided_slice %29 {offsets = [0, 190], sizes = [8, 2], strides = [1, 1]} : vector<8x192xf32> to vector<8x2xf32>
    %31 = vector.extract_strided_slice %29 {offsets = [0, 0], sizes = [8, 190], strides = [1, 1]} : vector<8x192xf32> to vector<8x190xf32>
    %32 = tpu.concatenate %30, %31 in 1 : vector<8x2xf32>, vector<8x190xf32> -> vector<8x192xf32>
    %c0_28 = arith.constant 0 : index
    %c0_29 = arith.constant 0 : index
    %33 = vector.load %arg5[%c0_28, %c0_29] : memref<4x192xf32, #tpu.memory_space<vmem>>, vector<1x192xf32>
    %34 = vector.broadcast %33 : vector<1x192xf32> to vector<8x192xf32>
    %35 = arith.mulf %32, %34 : vector<8x192xf32>
    %c0_30 = arith.constant 0 : index
    %c0_31 = arith.constant 0 : index
    %36 = vector.load %arg14[%c0_30, %c0_31] : memref<8x192xf32, #tpu.memory_space<vmem>>, vector<8x192xf32>
    tpu.vector_store %arg14[%c0_30, %c0_31], %35 {strides = array<i32>} : memref<8x192xf32, #tpu.memory_space<vmem>>, vector<8x192xf32>,
    %c0_32 = arith.constant 0 : index
    %c0_33 = arith.constant 0 : index
    %37 = vector.load %arg14[%c0_32, %c0_33] : memref<8x192xf32, #tpu.memory_space<vmem>>, vector<8x128xf32>
    %c72 = arith.constant 72 : index
    %c0_34 = arith.constant 0 : index
    %38 = vector.load %arg15[%c72, %c0_34] : memref<144x128xf32, #tpu.memory_space<vmem>>, vector<8x128xf32>
    tpu.vector_store %arg15[%c72, %c0_34], %37 {strides = array<i32>} : memref<144x128xf32, #tpu.memory_space<vmem>>, vector<8x128xf32>,
    %c0_35 = arith.constant 0 : index
    %c32_36 = arith.constant 32 : index
    %39 = vector.load %arg14[%c0_35, %c32_36] : memref<8x192xf32, #tpu.memory_space<vmem>>, vector<8x128xf32>
    %c96 = arith.constant 96 : index
    %c0_37 = arith.constant 0 : index
    %40 = vector.load %arg15[%c96, %c0_37] : memref<144x128xf32, #tpu.memory_space<vmem>>, vector<8x128xf32>
    tpu.vector_store %arg15[%c96, %c0_37], %39 {strides = array<i32>} : memref<144x128xf32, #tpu.memory_space<vmem>>, vector<8x128xf32>,
    %c0_38 = arith.constant 0 : index
    %c64_39 = arith.constant 64 : index
    %41 = vector.load %arg14[%c0_38, %c64_39] : memref<8x192xf32, #tpu.memory_space<vmem>>, vector<8x128xf32>
    %c120 = arith.constant 120 : index
    %c0_40 = arith.constant 0 : index
    %42 = vector.load %arg15[%c120, %c0_40] : memref<144x128xf32, #tpu.memory_space<vmem>>, vector<8x128xf32>
    tpu.vector_store %arg15[%c120, %c0_40], %41 {strides = array<i32>} : memref<144x128xf32, #tpu.memory_space<vmem>>, vector<8x128xf32>,
    %c0_41 = arith.constant 0 : index
    %c0_42 = arith.constant 0 : index
    %43 = vector.load %arg13[%c0_41, %c0_42] : memref<8x192xf32, #tpu.memory_space<vmem>>, vector<8x192xf32>
    %44 = vector.extract_strided_slice %43 {offsets = [0, 191], sizes = [8, 1], strides = [1, 1]} : vector<8x192xf32> to vector<8x1xf32>
    %45 = vector.extract_strided_slice %43 {offsets = [0, 0], sizes = [8, 191], strides = [1, 1]} : vector<8x192xf32> to vector<8x191xf32>
    %46 = tpu.concatenate %44, %45 in 1 : vector<8x1xf32>, vector<8x191xf32> -> vector<8x192xf32>
    %c1 = arith.constant 1 : index
    %c0_43 = arith.constant 0 : index
    %47 = vector.load %arg5[%c1, %c0_43] : memref<4x192xf32, #tpu.memory_space<vmem>>, vector<1x192xf32>
    %48 = vector.broadcast %47 : vector<1x192xf32> to vector<8x192xf32>
    %49 = arith.mulf %46, %48 : vector<8x192xf32>
    %c0_44 = arith.constant 0 : index
    %c0_45 = arith.constant 0 : index
    %50 = vector.load %arg14[%c0_44, %c0_45] : memref<8x192xf32, #tpu.memory_space<vmem>>, vector<8x192xf32>
    tpu.vector_store %arg14[%c0_44, %c0_45], %49 {strides = array<i32>} : memref<8x192xf32, #tpu.memory_space<vmem>>, vector<8x192xf32>,
    %c0_46 = arith.constant 0 : index
    %c16_47 = arith.constant 16 : index
    %51 = vector.load %arg14[%c0_46, %c16_47] : memref<8x192xf32, #tpu.memory_space<vmem>>, vector<8x128xf32>
    %c0_48 = arith.constant 0 : index
    %c0_49 = arith.constant 0 : index
    %52 = vector.load %arg15[%c0_48, %c0_49] : memref<144x128xf32, #tpu.memory_space<vmem>>, vector<8x128xf32>
    tpu.vector_store %arg15[%c0_48, %c0_49], %51 {strides = array<i32>} : memref<144x128xf32, #tpu.memory_space<vmem>>, vector<8x128xf32>,
    %c0_50 = arith.constant 0 : index
    %c32_51 = arith.constant 32 : index
    %53 = vector.load %arg14[%c0_50, %c32_51] : memref<8x192xf32, #tpu.memory_space<vmem>>, vector<8x128xf32>
    %c24 = arith.constant 24 : index
    %c0_52 = arith.constant 0 : index
    %54 = vector.load %arg15[%c24, %c0_52] : memref<144x128xf32, #tpu.memory_space<vmem>>, vector<8x128xf32>
    tpu.vector_store %arg15[%c24, %c0_52], %53 {strides = array<i32>} : memref<144x128xf32, #tpu.memory_space<vmem>>, vector<8x128xf32>,
    %c0_53 = arith.constant 0 : index
    %c48_54 = arith.constant 48 : index
    %55 = vector.load %arg14[%c0_53, %c48_54] : memref<8x192xf32, #tpu.memory_space<vmem>>, vector<8x128xf32>
    %c48_55 = arith.constant 48 : index
    %c0_56 = arith.constant 0 : index
    %56 = vector.load %arg15[%c48_55, %c0_56] : memref<144x128xf32, #tpu.memory_space<vmem>>, vector<8x128xf32>
    tpu.vector_store %arg15[%c48_55, %c0_56], %55 {strides = array<i32>} : memref<144x128xf32, #tpu.memory_space<vmem>>, vector<8x128xf32>,
    %c0_57 = arith.constant 0 : index
    %c0_58 = arith.constant 0 : index
    %57 = vector.load %arg13[%c0_57, %c0_58] : memref<8x192xf32, #tpu.memory_space<vmem>>, vector<8x192xf32>
    %58 = vector.extract_strided_slice %57 {offsets = [0, 1], sizes = [8, 191], strides = [1, 1]} : vector<8x192xf32> to vector<8x191xf32>
    %59 = vector.extract_strided_slice %57 {offsets = [0, 0], sizes = [8, 1], strides = [1, 1]} : vector<8x192xf32> to vector<8x1xf32>
    %60 = tpu.concatenate %58, %59 in 1 : vector<8x191xf32>, vector<8x1xf32> -> vector<8x192xf32>
    %c2 = arith.constant 2 : index
    %c0_59 = arith.constant 0 : index
    %61 = vector.load %arg5[%c2, %c0_59] : memref<4x192xf32, #tpu.memory_space<vmem>>, vector<1x192xf32>
    %62 = vector.broadcast %61 : vector<1x192xf32> to vector<8x192xf32>
    %63 = arith.mulf %60, %62 : vector<8x192xf32>
    %c0_60 = arith.constant 0 : index
    %c0_61 = arith.constant 0 : index
    %64 = vector.load %arg14[%c0_60, %c0_61] : memref<8x192xf32, #tpu.memory_space<vmem>>, vector<8x192xf32>
    tpu.vector_store %arg14[%c0_60, %c0_61], %63 {strides = array<i32>} : memref<8x192xf32, #tpu.memory_space<vmem>>, vector<8x192xf32>,
    %c0_62 = arith.constant 0 : index
    %c16_63 = arith.constant 16 : index
    %65 = vector.load %arg14[%c0_62, %c16_63] : memref<8x192xf32, #tpu.memory_space<vmem>>, vector<8x128xf32>
    %c16_64 = arith.constant 16 : index
    %c0_65 = arith.constant 0 : index
    %66 = vector.load %arg15[%c16_64, %c0_65] : memref<144x128xf32, #tpu.memory_space<vmem>>, vector<8x128xf32>
    tpu.vector_store %arg15[%c16_64, %c0_65], %65 {strides = array<i32>} : memref<144x128xf32, #tpu.memory_space<vmem>>, vector<8x128xf32>,
    %c0_66 = arith.constant 0 : index
    %c32_67 = arith.constant 32 : index
    %67 = vector.load %arg14[%c0_66, %c32_67] : memref<8x192xf32, #tpu.memory_space<vmem>>, vector<8x128xf32>
    %c40 = arith.constant 40 : index
    %c0_68 = arith.constant 0 : index
    %68 = vector.load %arg15[%c40, %c0_68] : memref<144x128xf32, #tpu.memory_space<vmem>>, vector<8x128xf32>
    tpu.vector_store %arg15[%c40, %c0_68], %67 {strides = array<i32>} : memref<144x128xf32, #tpu.memory_space<vmem>>, vector<8x128xf32>,
    %c0_69 = arith.constant 0 : index
    %c48_70 = arith.constant 48 : index
    %69 = vector.load %arg14[%c0_69, %c48_70] : memref<8x192xf32, #tpu.memory_space<vmem>>, vector<8x128xf32>
    %c64_71 = arith.constant 64 : index
    %c0_72 = arith.constant 0 : index
    %70 = vector.load %arg15[%c64_71, %c0_72] : memref<144x128xf32, #tpu.memory_space<vmem>>, vector<8x128xf32>
    tpu.vector_store %arg15[%c64_71, %c0_72], %69 {strides = array<i32>} : memref<144x128xf32, #tpu.memory_space<vmem>>, vector<8x128xf32>,
    %c0_73 = arith.constant 0 : index
    %c0_74 = arith.constant 0 : index
    %71 = vector.load %arg13[%c0_73, %c0_74] : memref<8x192xf32, #tpu.memory_space<vmem>>, vector<8x192xf32>
    %72 = vector.extract_strided_slice %71 {offsets = [0, 2], sizes = [8, 190], strides = [1, 1]} : vector<8x192xf32> to vector<8x190xf32>
    %73 = vector.extract_strided_slice %71 {offsets = [0, 0], sizes = [8, 2], strides = [1, 1]} : vector<8x192xf32> to vector<8x2xf32>
    %74 = tpu.concatenate %72, %73 in 1 : vector<8x190xf32>, vector<8x2xf32> -> vector<8x192xf32>
    %c3 = arith.constant 3 : index
    %c0_75 = arith.constant 0 : index
    %75 = vector.load %arg5[%c3, %c0_75] : memref<4x192xf32, #tpu.memory_space<vmem>>, vector<1x192xf32>
    %76 = vector.broadcast %75 : vector<1x192xf32> to vector<8x192xf32>
    %77 = arith.mulf %74, %76 : vector<8x192xf32>
    %c0_76 = arith.constant 0 : index
    %c0_77 = arith.constant 0 : index
    %78 = vector.load %arg14[%c0_76, %c0_77] : memref<8x192xf32, #tpu.memory_space<vmem>>, vector<8x192xf32>
    tpu.vector_store %arg14[%c0_76, %c0_77], %77 {strides = array<i32>} : memref<8x192xf32, #tpu.memory_space<vmem>>, vector<8x192xf32>,
    %c0_78 = arith.constant 0 : index
    %c0_79 = arith.constant 0 : index
    %79 = vector.load %arg14[%c0_78, %c0_79] : memref<8x192xf32, #tpu.memory_space<vmem>>, vector<8x128xf32>
    %c88 = arith.constant 88 : index
    %c0_80 = arith.constant 0 : index
    %80 = vector.load %arg15[%c88, %c0_80] : memref<144x128xf32, #tpu.memory_space<vmem>>, vector<8x128xf32>
    tpu.vector_store %arg15[%c88, %c0_80], %79 {strides = array<i32>} : memref<144x128xf32, #tpu.memory_space<vmem>>, vector<8x128xf32>,
    %c0_81 = arith.constant 0 : index
    %c32_82 = arith.constant 32 : index
    %81 = vector.load %arg14[%c0_81, %c32_82] : memref<8x192xf32, #tpu.memory_space<vmem>>, vector<8x128xf32>
    %c112 = arith.constant 112 : index
    %c0_83 = arith.constant 0 : index
    %82 = vector.load %arg15[%c112, %c0_83] : memref<144x128xf32, #tpu.memory_space<vmem>>, vector<8x128xf32>
    tpu.vector_store %arg15[%c112, %c0_83], %81 {strides = array<i32>} : memref<144x128xf32, #tpu.memory_space<vmem>>, vector<8x128xf32>,
    %c0_84 = arith.constant 0 : index
    %c64_85 = arith.constant 64 : index
    %83 = vector.load %arg14[%c0_84, %c64_85] : memref<8x192xf32, #tpu.memory_space<vmem>>, vector<8x128xf32>
    %c136 = arith.constant 136 : index
    %c0_86 = arith.constant 0 : index
    %84 = vector.load %arg15[%c136, %c0_86] : memref<144x128xf32, #tpu.memory_space<vmem>>, vector<8x128xf32>
    tpu.vector_store %arg15[%c136, %c0_86], %83 {strides = array<i32>} : memref<144x128xf32, #tpu.memory_space<vmem>>, vector<8x128xf32>,
    %c32_87 = arith.constant 32 : index
    %c0_88 = arith.constant 0 : index
    %85 = vector.load %arg15[%c32_87, %c0_88] : memref<144x128xf32, #tpu.memory_space<vmem>>, vector<8x128xf32>
    %c0_89 = arith.constant 0 : index
    %c0_90 = arith.constant 0 : index
    %86 = vector.load %arg6[%c0_89, %c0_90] : memref<4x8xf32, #tpu.memory_space<vmem>>, vector<4x8xf32>
    %cst_91 = arith.constant dense<0.000000e+00> : vector<4x128xf32>
    %87 = tpu.matmul %86, %85, %cst_91 {dimension_numbers = #tpu.dot_dimension_numbers<[1], [0], [0], [1], [0, 0, 1, 1], [], []>} : vector<4x8xf32>, vector<8x128xf32>, vector<4x128xf32> -> vector<4x128xf32>
    %c0_92 = arith.constant 0 : index
    %c0_93 = arith.constant 0 : index
    %88 = vector.load %arg7[%c0_92, %c0_93] : memref<4x72xf32, #tpu.memory_space<vmem>>, vector<4x72xf32>
    %c0_94 = arith.constant 0 : index
    %c0_95 = arith.constant 0 : index
    %89 = vector.load %arg15[%c0_94, %c0_95] : memref<144x128xf32, #tpu.memory_space<vmem>>, vector<72x128xf32>
    %cst_96 = arith.constant dense<0.000000e+00> : vector<4x128xf32>
    %90 = tpu.matmul %88, %89, %cst_96 {dimension_numbers = #tpu.dot_dimension_numbers<[1], [0], [0], [1], [0, 0, 1, 1], [], []>} : vector<4x72xf32>, vector<72x128xf32>, vector<4x128xf32> -> vector<4x128xf32>
    %c0_97 = arith.constant 0 : index
    %c0_98 = arith.constant 0 : index
    %91 = vector.load %arg8[%c0_97, %c0_98] : memref<4x72xf32, #tpu.memory_space<vmem>>, vector<4x72xf32>
    %c72_99 = arith.constant 72 : index
    %c0_100 = arith.constant 0 : index
    %92 = vector.load %arg15[%c72_99, %c0_100] : memref<144x128xf32, #tpu.memory_space<vmem>>, vector<72x128xf32>
    %cst_101 = arith.constant dense<0.000000e+00> : vector<4x128xf32>
    %93 = tpu.matmul %91, %92, %cst_101 {dimension_numbers = #tpu.dot_dimension_numbers<[1], [0], [0], [1], [0, 0, 1, 1], [], []>} : vector<4x72xf32>, vector<72x128xf32>, vector<4x128xf32> -> vector<4x128xf32>
    %c0_102 = arith.constant 0 : index
    %c0_103 = arith.constant 0 : index
    %94 = vector.load %arg9[%c0_102, %c0_103] : memref<12x1xf32, #tpu.memory_space<vmem>>, vector<4x1xf32>
    %95 = vector.broadcast %94 : vector<4x1xf32> to vector<4x128xf32>
    %96 = arith.addf %87, %95 : vector<4x128xf32>
    %cst_104 = arith.constant 0.000000e+00 : f32
    %97 = vector.broadcast %cst_104 : f32 to vector<4x128xf32>
    %98 = arith.maximumf %96, %97 : vector<4x128xf32>
    %c4_105 = arith.constant 4 : index
    %c0_106 = arith.constant 0 : index
    %99 = vector.load %arg9[%c4_105, %c0_106] : memref<12x1xf32, #tpu.memory_space<vmem>>, vector<4x1xf32>
    %100 = vector.broadcast %99 : vector<4x1xf32> to vector<4x128xf32>
    %101 = arith.addf %90, %100 : vector<4x128xf32>
    %cst_107 = arith.constant 0.000000e+00 : f32
    %102 = vector.broadcast %cst_107 : f32 to vector<4x128xf32>
    %103 = arith.maximumf %101, %102 : vector<4x128xf32>
    %c8_108 = arith.constant 8 : index
    %c0_109 = arith.constant 0 : index
    %104 = vector.load %arg9[%c8_108, %c0_109] : memref<12x1xf32, #tpu.memory_space<vmem>>, vector<4x1xf32>
    %105 = vector.broadcast %104 : vector<4x1xf32> to vector<4x128xf32>
    %106 = arith.addf %93, %105 : vector<4x128xf32>
    %cst_110 = arith.constant 0.000000e+00 : f32
    %107 = vector.broadcast %cst_110 : f32 to vector<4x128xf32>
    %108 = arith.maximumf %106, %107 : vector<4x128xf32>
    %c0_111 = arith.constant 0 : index
    %c0_112 = arith.constant 0 : index
    %109 = vector.load %arg10[%c0_111, %c0_112] : memref<4x12xf32, #tpu.memory_space<vmem>>, vector<4x4xf32>
    %cst_113 = arith.constant dense<0.000000e+00> : vector<4x128xf32>
    %110 = tpu.matmul %109, %98, %cst_113 {dimension_numbers = #tpu.dot_dimension_numbers<[1], [0], [0], [1], [0, 0, 1, 1], [], []>} : vector<4x4xf32>, vector<4x128xf32>, vector<4x128xf32> -> vector<4x128xf32>
    %c0_114 = arith.constant 0 : index
    %c4_115 = arith.constant 4 : index
    %111 = vector.load %arg10[%c0_114, %c4_115] : memref<4x12xf32, #tpu.memory_space<vmem>>, vector<4x4xf32>
    %cst_116 = arith.constant dense<0.000000e+00> : vector<4x128xf32>
    %112 = tpu.matmul %111, %103, %cst_116 {dimension_numbers = #tpu.dot_dimension_numbers<[1], [0], [0], [1], [0, 0, 1, 1], [], []>} : vector<4x4xf32>, vector<4x128xf32>, vector<4x128xf32> -> vector<4x128xf32>
    %113 = arith.addf %110, %112 : vector<4x128xf32>
    %c0_117 = arith.constant 0 : index
    %c8_118 = arith.constant 8 : index
    %114 = vector.load %arg10[%c0_117, %c8_118] : memref<4x12xf32, #tpu.memory_space<vmem>>, vector<4x4xf32>
    %cst_119 = arith.constant dense<0.000000e+00> : vector<4x128xf32>
    %115 = tpu.matmul %114, %108, %cst_119 {dimension_numbers = #tpu.dot_dimension_numbers<[1], [0], [0], [1], [0, 0, 1, 1], [], []>} : vector<4x4xf32>, vector<4x128xf32>, vector<4x128xf32> -> vector<4x128xf32>
    %116 = arith.addf %113, %115 : vector<4x128xf32>
    %c0_120 = arith.constant 0 : index
    %c0_121 = arith.constant 0 : index
    %117 = vector.load %arg11[%c0_120, %c0_121] : memref<4x1xf32, #tpu.memory_space<vmem>>, vector<4x1xf32>
    %118 = vector.broadcast %117 : vector<4x1xf32> to vector<4x128xf32>
    %119 = arith.addf %116, %118 : vector<4x128xf32>
    %cst_122 = arith.constant 5.000000e-01 : f32
    %120 = vector.broadcast %cst_122 : f32 to vector<4x128xf32>
    %121 = arith.mulf %120, %119 : vector<4x128xf32>
    %122 = math.tanh %121 : vector<4x128xf32>
    %cst_123 = arith.constant 5.000000e-01 : f32
    %123 = vector.broadcast %cst_123 : f32 to vector<4x128xf32>
    %124 = arith.mulf %123, %122 : vector<4x128xf32>
    %cst_124 = arith.constant 1.500000e+00 : f32
    %125 = vector.broadcast %cst_124 : f32 to vector<4x128xf32>
    %126 = arith.addf %125, %124 : vector<4x128xf32>
    %c0_125 = arith.constant 0 : index
    %c0_126 = arith.constant 0 : index
    %c0_127 = arith.constant 0 : index
    %127 = vector.load %arg2[%c0_125, %c0_126, %c0_127] : memref<1x4x128xf32, #tpu.memory_space<vmem>>, vector<1x4x128xf32>
    %128 = vector.shape_cast %127 : vector<1x4x128xf32> to vector<4x128xf32>
    %129 = arith.mulf %128, %126 : vector<4x128xf32>
    %c0_128 = arith.constant 0 : index
    %c0_129 = arith.constant 0 : index
    %c0_130 = arith.constant 0 : index
    %130 = vector.load %arg12[%c0_128, %c0_129, %c0_130] : memref<1x4x128xf32, #tpu.memory_space<vmem>>, vector<1x4x128xf32>
    %131 = vector.shape_cast %130 : vector<1x4x128xf32> to vector<4x128xf32>
    %132 = vector.shape_cast %129 : vector<4x128xf32> to vector<1x4x128xf32>
    tpu.vector_store %arg12[%c0_128, %c0_129, %c0_130], %132 {strides = array<i32>} : memref<1x4x128xf32, #tpu.memory_space<vmem>>, vector<1x4x128xf32>,
    return
  }
  func.func @transform_0(%arg0: i32, %arg1: i32) -> (i32, i32, i32) {
    %c0_i32 = arith.constant 0 : i32
    %c0_i32_0 = arith.constant 0 : i32
    return %arg0, %c0_i32, %arg1 : i32, i32, i32
  }
  func.func @transform_1(%arg0: i32, %arg1: i32) -> (i32, i32, i32) {
    %c1_i32 = arith.constant 1 : i32
    %0 = arith.muli %arg1, %c1_i32 : i32
    %c1_i32_0 = arith.constant 1 : i32
    %1 = arith.subi %0, %c1_i32_0 : i32
    %c0_i32 = arith.constant 0 : i32
    %2 = arith.maxsi %1, %c0_i32 : i32
    %c0_i32_1 = arith.constant 0 : i32
    %c0_i32_2 = arith.constant 0 : i32
    return %arg0, %c0_i32_1, %2 : i32, i32, i32
  }
  func.func @transform_2(%arg0: i32, %arg1: i32) -> (i32, i32, i32) {
    %c1_i32 = arith.constant 1 : i32
    %0 = arith.addi %arg1, %c1_i32 : i32
    %c1_i32_0 = arith.constant 1 : i32
    %1 = arith.muli %0, %c1_i32_0 : i32
    %c1_i32_1 = arith.constant 1 : i32
    %2 = arith.minsi %1, %c1_i32_1 : i32
    %c0_i32 = arith.constant 0 : i32
    %c0_i32_2 = arith.constant 0 : i32
    return %arg0, %c0_i32, %2 : i32, i32, i32
  }
  func.func @transform_3(%arg0: i32, %arg1: i32) -> (i32, i32) {
    %c0_i32 = arith.constant 0 : i32
    %c0_i32_0 = arith.constant 0 : i32
    %c0_i32_1 = arith.constant 0 : i32
    return %c0_i32, %c0_i32_0 : i32, i32
  }
  func.func @transform_4(%arg0: i32, %arg1: i32) -> (i32, i32) {
    %c0_i32 = arith.constant 0 : i32
    %c0_i32_0 = arith.constant 0 : i32
    %c0_i32_1 = arith.constant 0 : i32
    return %c0_i32, %c0_i32_0 : i32, i32
  }
  func.func @transform_5(%arg0: i32, %arg1: i32) -> (i32, i32) {
    %c0_i32 = arith.constant 0 : i32
    %c0_i32_0 = arith.constant 0 : i32
    %c0_i32_1 = arith.constant 0 : i32
    return %c0_i32, %c0_i32_0 : i32, i32
  }
  func.func @transform_6(%arg0: i32, %arg1: i32) -> (i32, i32) {
    %c0_i32 = arith.constant 0 : i32
    %c0_i32_0 = arith.constant 0 : i32
    %c0_i32_1 = arith.constant 0 : i32
    return %c0_i32, %c0_i32_0 : i32, i32
  }
  func.func @transform_7(%arg0: i32, %arg1: i32) -> (i32, i32) {
    %c0_i32 = arith.constant 0 : i32
    %c0_i32_0 = arith.constant 0 : i32
    %c0_i32_1 = arith.constant 0 : i32
    return %c0_i32, %c0_i32_0 : i32, i32
  }
  func.func @transform_8(%arg0: i32, %arg1: i32) -> (i32, i32) {
    %c0_i32 = arith.constant 0 : i32
    %c0_i32_0 = arith.constant 0 : i32
    %c0_i32_1 = arith.constant 0 : i32
    return %c0_i32, %c0_i32_0 : i32, i32
  }
  func.func @transform_9(%arg0: i32, %arg1: i32) -> (i32, i32) {
    %c0_i32 = arith.constant 0 : i32
    %c0_i32_0 = arith.constant 0 : i32
    %c0_i32_1 = arith.constant 0 : i32
    return %c0_i32, %c0_i32_0 : i32, i32
  }
  func.func @transform_10(%arg0: i32, %arg1: i32) -> (i32, i32, i32) {
    %c0_i32 = arith.constant 0 : i32
    %c0_i32_0 = arith.constant 0 : i32
    return %arg0, %c0_i32, %arg1 : i32, i32, i32
  }
}

</mosaic_0001>

<bundles_post_ra>
// kernel: tpu_custom_call.1
= control target key start
LH: loop header
LB: loop body
LE: loop exit
PB: predicated region body
PF: predicated region fallthrough
CT: control target
= control target key end

     0   :  { %s2629_s0 = inlined_call_operand.vmem [shape: f32[2,4,256], index: 0, kind: input, shape index: {}]   ;;  %s2630_s1 = inlined_call_operand.hbm [shape: f32[2,4,256], index: 1, kind: input, shape index: {}]   ;;  %s2631_s2 = inlined_call_operand.hbm [shape: f32[2,4,256], index: 2, kind: input, shape index: {}]   ;;  %s2632_s3 = inlined_call_operand.vmem [shape: f32[4,192], index: 3, kind: input, shape index: {}]   ;;  %s2633_s4 = inlined_call_operand.vmem [shape: f32[4,8], index: 4, kind: input, shape index: {}]   ;;  %s2634_s5 = inlined_call_operand.hbm [shape: f32[4,72], index: 5, kind: input, shape index: {}]   ;;  %s2635_s6 = inlined_call_operand.vmem [shape: f32[4,72], index: 6, kind: input, shape index: {}]   ;;  %s2636_s7 = inlined_call_operand.vmem [shape: f32[12,1], index: 7, kind: input, shape index: {}]   ;;  %s2637_s8 = inlined_call_operand.vmem [shape: f32[4,12], index: 8, kind: input, shape index: {}]   ;;  %s2638_s9 = inlined_call_operand.vmem [shape: f32[4,1], index: 9, kind: input, shape index: {}]   ;;  %s2639_s10 = inlined_call_operand.hbm [shape: f32[2,4,256], index: 10, kind: output, shape index: {}]  }
   0x1   :  { %2662 = sst [smem:[#allocation23_spill]] %s2629_s0 }
   0x2   :  { %2663 = sst [smem:[#allocation24_spill]] %s2630_s1 }
   0x3   :  { %2664 = sst [smem:[#allocation25_spill]] %s2631_s2 }
   0x4   :  { %2665 = sst [smem:[#allocation26_spill]] %s2632_s3 }
   0x5   :  { %2666 = sst [smem:[#allocation27_spill]] %s2633_s4 }
   0x6   :  { %2667 = sst [smem:[#allocation28_spill]] %s2634_s5 }
   0x7   :  { %2668 = sst [smem:[#allocation29_spill]] %s2635_s6 }
   0x8   :  { %2669 = sst [smem:[#allocation30_spill]] %s2636_s7 }
   0x9   :  { %2670 = sst [smem:[#allocation31_spill]] %s2637_s8 }
   0xa   :  { %2671 = sst [smem:[#allocation32_spill]] %s2638_s9 }
   0xb   :  { %2672 = sst [smem:[#allocation33_spill]] %s2639_s10 }
   0xc   :  { %15 = vsyncpa [#allocation6], 0 }
   0xd   :  { %17 = vsyncpa [#allocation6 + $0x1], 0 }
   0xe   :  { %18 = vsyncpa [#allocation9], 0 }
   0xf   :  { %20 = vsyncpa [#allocation9 + $0x1], 0 }
  0x10   :  { %21 = vsyncpa [#allocation7], 0 }
  0x11   :  { %23 = vsyncpa [#allocation7 + $0x1], 0  ;;  %s2138_s13 = smov 0   ;;  %s2140_s14 = smov 0  }
  0x12   :  { %s2142_s15 = smov 0   ;;  %s2144_s16 = smov 0  }
  0x13   :  { %s2146_s17 = smov 0   ;;  %s2148_s18 = smov 0  }
  0x14   :  { %s2150_s19 = smov 0   ;;  %s2152_s20 = smov 0  }
  0x15   :  { %s2154_s21 = smov 0   ;;  %s2156_s22 = smov 0  }
  0x16   :  { %s2158_s23 = smov 0   ;;  %s2160_s24 = smov 0  }
  0x17   :  { %s2162_s25 = smov 0   ;;  %s2164_s26 = smov 0  }
  0x18 LB: > { %2673 = sst [smem:[#allocation16_spill]] %s2003_s13  ;;  %s2205_s27 = sadd.s32 4294967295, %s2055_s26   ;;  %s2055_s26 = sphi %s2164_s26, %s29_s26   ;;  %s2051_s25 = sphi %s2162_s25, %s2741_s25   ;;  %s2047_s24 = sphi %s2160_s24, %s2740_s24   ;;  %s2043_s23 = sphi %s2158_s23, %s2739_s23   ;;  %s2039_s22 = sphi %s2156_s22, %s2738_s22   ;;  %s2035_s21 = sphi %s2154_s21, %s2737_s21   ;;  %s2031_s20 = sphi %s2152_s20, %s2736_s20   ;;  %s2027_s19 = sphi %s2150_s19, %s2735_s19   ;;  %s2023_s18 = sphi %s2148_s18, %s2734_s18   ;;  %s2019_s17 = sphi %s2146_s17, %s2733_s17   ;;  %s2015_s16 = sphi %s2144_s16, %s2732_s16   ;;  %s2011_s15 = sphi %s2142_s15, %s2731_s15   ;;  %s2007_s14 = sphi %s2140_s14, %s2730_s14   ;;  %s2003_s13 = sphi %s2138_s13, %s2729_s13  }
  0x19   : > { %2674 = sst [smem:[#allocation17_spill]] %s2007_s14  ;;  %s1518_s28 = sadd.s32 4294967294, %s2055_s26  }
  0x1a   : > { %2675 = sst [smem:[#allocation18_spill]] %s2039_s22  ;;  %p97_p0 = scmp.ne.s32.totalorder %s2031_s20, %s2027_s19 }
  0x1b   : > { %2676 = sst [smem:[#allocation19_spill]] %s2043_s23  ;;  %p2653_p1 = scmp.eq.s32.totalorder %s2205_s27, 0 }
  0x1c   : > { %p131_p2 = scmp.ne.s32.totalorder %s2019_s17, %s2015_s16  ;;  %p303_p4 = scmp.ne.s32.totalorder %s2011_s15, %s2007_s14 }
  0x1d   : > { %p2214_p3 = por %p2653_p1, %p97_p0  ;;  %p304_p6 = scmp.eq.s32.totalorder %s2205_s27, 3 }
  0x1e   : > { %p2222_p5 = por %p131_p2, %p2653_p1  ;;  %p309_p7 = scmp.ne.s32.totalorder %s2007_s14, %s2003_s13 }
  0x1f   : > { %s2677_s30 = scalar_select %p2214_p3, 1, 0 }
  0x20   : > { %s2678_s11 = scalar_select %p2222_p5, 1, 0 }
  0x21   : > { %p310_p8 = scmp.eq.s32.totalorder %s1518_s28, 3  ;;  %p2229_p9 = por %p304_p6, %p303_p4 }
  0x22   : > { %p1521_p10 = scmp.ge.s32.totalorder %s2055_s26, 1  ;;  %p317_p12 = scmp.lt.s32.totalorder %s2055_s26, 5 }
  0x23   : > { %s2679_s12 = scalar_select %p2229_p9, 1, 0 }
  0x24   : > { %p2234_p11 = por %p310_p8, %p309_p7  ;;  %p2239_p13 = pnand %p1521_p10, %p317_p12 }
  0x25   : > { %2680 = sst [smem:[#allocation20_spill]] %s2679_s12  ;;  %s2057_s29 = smov [#allocation10]  }
  0x26   : > { %s2681_s16 = scalar_select %p2234_p11, 1, 0 }
  0x27   : > { %s2683_s19 = scalar_select %p2239_p13, 1, 0 }
  0x28   : > { %2682 = sst [smem:[#allocation21_spill]] %s2681_s16  ;;  %s336_s10 = sshll.u32 %s2057_s29, 4  ;;  %s337_s10 = int_to_ptr.vmem [resolvable:$true] %s336_s10 }
  0x29   : > { %p1659_p0 = pneg %p2239_p13  ;;  %s38_s28 = sadd.s32 1, %s2047_s24 }
  0x2a   : > { %s1828_s13 = scalar_lea.vmem %s337_s10, 64  ;;  %p1836_p11 = scmp.lt.s32.totalorder %s337_s10, %s337_s10 }
  0x2b   : > { %p1660_p2 = pnand %p1659_p0, %p2653_p1  ;;  %p1829_p6 = scmp.ne.s32.totalorder %s337_s10, %s1828_s13 }
  0x2c   : > { %p1837_p9 = scmp.lt.s32.totalorder %s1828_s13, %s1828_s13 }
  0x2d   : > { %p1819_p4 = pneg %p1660_p2 }
  0x2e   : > { %p1838_p10 = por %p1837_p9, %p1836_p11 }
  0x2f   : > { %p1831_p7 = pnand %p1829_p6, %p1819_p4 }
  0x31   : > { %p1832_p8 = pneg %p1831_p7 }
  0x33   : > { %p1839_p12 = pnand %p1838_p10, %p1832_p8 }
  0x35   : > { %1842 = shalt.err (!%p1839_p12)
}
  0x36   : > { %s2684_s5 = sld [smem:[#allocation28_spill]]  ;;  %p39_p0 = scmp.ge.s32.totalorder %s38_s28, 2 }
  0x37   : > { %s41_s13 = sadd.s32 1, %s2051_s25  ;;  %s84_s29 = sadd.s32 1, %s2035_s21 }
  0x38   : > { %s2743_s28 = smov (%p39_p0, %s38_s28), 0  ;;  %s2745_s13 = smov (!%p39_p0, %s41_s13), %s2051_s25 }
  0x39   : > { %p43_p9 = scmp.ge.s32.totalorder %s2745_s13, 2  ;;  %p91_p11 = scmp.ne.s32.totalorder %s2035_s21, %s2031_s20 }
  0x3a   : > { %p2655_p8 = scmp.lt.s32.totalorder %s2055_s26, 4  ;;  %s2687_s6 = sadd.s32 1, %s2011_s15 }
  0x3b   : > { %s2747_s13 = smov (%p43_p9, %s2745_s13), 0  ;;  %s370_s8 = sand.u32 1, %s2035_s21  }
  0x3c   : > { %1662 = dma.hbm_to_vmem [thread:$0]  (!%p1660_p2), %s2684_s5, 64, %s337_s10, [#allocation9]  }
  0x3d   : > { %2685 = sst [smem:[#allocation22_spill]] %s2747_s13  ;;  %s2260_s12 = ssub.s32 %s2051_s25, %s2747_s13 }
  0x3e   : > { %p2654_p2 = scmp.eq.s32.totalorder %s2055_s26, 0  ;;  %p2656_p4 = scmp.eq.s32.totalorder %s2260_s12, 0 }
  0x3f   : > { %s289_s5 = ssub.s32 %s2047_s24, %s2743_s28  ;;  %s1524_s7 = sshll.u32 %s370_s8, 2 }
  0x40   : > { %p2268_p6 = por %p2654_p2, %p91_p11  ;;  %s290_s13 = sor.u32 %s289_s5, %s2260_s12 }
  0x41   : > { %s2275_s16 = scalar_select %p2656_p4, %s2035_s21, %s84_s29  }
  0x42   : > { %p291_p7 = scmp.eq.s32.totalorder %s290_s13, 0  ;;  %s374_s4 = scalar_lea.vmem [#allocation5], %s1524_s7 }
  0x43   : > { %s386_s3 = sshll.u32 %s374_s4, 4  ;;  %s1997_s0 = sshll.u32 %s2051_s25, 7  ;;  %s387_s3 = int_to_ptr.vmem [resolvable:$true] %s386_s3 }
  0x44   : > { %s2284_s9 = scalar_select %p291_p7, %s2011_s15, %s2687_s6  }
  0x45   : > { %s2688_s1 = sld [smem:[#allocation24_spill]]  ;;  %p2297_p10 = pnand %p2655_p8, %p2268_p6 }
  0x46   : > { %s371_s6 = scalar_lea.sflag [#allocation6], %s370_s8 }
  0x47   : > { %p1845_p0 = pneg %p2297_p10 }
  0x4b   : > { %s384_s14 = scalar_lea.hbm %s2688_s1, %s1997_s0 }
  0x4c   : > { %s1843_s13 = scalar_lea.hbm %s384_s14, 64  ;;  %p1849_p7 = scmp.lt.s32.totalorder %s384_s14, %s2688_s1 }
  0x4d   : > { %p1844_p12 = scmp.ne.s32.totalorder %s384_s14, %s1843_s13 }
  0x4f   : > { %p1846_p9 = pnand %p1845_p0, %p1844_p12 }
  0x51   : > { %p1847_p11 = pneg %p1846_p9 }
  0x53   : > { %p1852_p1 = pnand %p1849_p7, %p1847_p11 }
  0x55   : > { %1855 = shalt.err (!%p1852_p1)
}
  0x56   : > { %s1856_s22 = scalar_lea.vmem %s387_s3, 64  ;;  %s2058_s23 = smov [#allocation5]  }
  0x57   : > { %p1857_p2 = scmp.ne.s32.totalorder %s387_s3, %s1856_s22  ;;  %s1861_s29 = sshll.u32 %s2058_s23, 4  ;;  %s1862_s29 = int_to_ptr.vmem [resolvable:$false] %s1861_s29 }
  0x58   : > { %s1863_s8 = scalar_lea.vmem %s1862_s29, 128  ;;  %p1864_p4 = scmp.lt.s32.totalorder %s387_s3, %s1862_s29 }
  0x59   : > { %p1859_p6 = pnand %p1857_p2, %p1845_p0  ;;  %p1865_p5 = scmp.lt.s32.totalorder %s1863_s8, %s1856_s22 }
  0x5b   : > { %p1860_p8 = pneg %p1859_p6  ;;  %p1866_p3 = por %p1865_p5, %p1864_p4 }
  0x5d   : > { %p1867_p13 = pnand %p1866_p3, %p1860_p8 }
  0x5f   : > { %1870 = shalt.err (!%p1867_p13)
}
  0x60   : > { %1666 = dma.hbm_to_vmem [thread:$0]  (!%p2297_p10), %s384_s14, 64, %s387_s3, %s371_s6  }
  0x61   : > { %s118_s10 = sadd.s32 1, %s2023_s18  ;;  %p125_p1 = scmp.ne.s32.totalorder %s2023_s18, %s2019_s17 }
  0x62   : > { %p2690_p2 = scmp.eq.s32.totalorder %s2260_s12, 0  ;;  %p2691_p3 = scmp.eq.s32.totalorder %s2055_s26, 0 }
  0x63   : > { %s393_s4 = sand.u32 1, %s2055_s26   ;;  %s395_s5 = sand.u32 1, %s2023_s18  }
  0x64   : > { %s2314_s13 = scalar_select %p2690_p2, %s2023_s18, %s118_s10  }
  0x65   : > { %p127_p5 = por %p125_p1, %p2691_p3  ;;  %s1528_s7 = sshll.u32 %s395_s5, 2 }
  0x66   : > { %s1999_s22 = sadd.s32 64, %s1997_s0  ;;  %s2692_s2 = sld [smem:[#allocation25_spill]] }
  0x67   : > { %s397_s3 = scalar_lea.vmem [#allocation8], %s1528_s7  ;;  %p2693_p13 = scmp.lt.s32.totalorder %s2055_s26, 4 }
  0x68   : > { %s409_s14 = sshll.u32 %s397_s3, 4  ;;  %s394_s6 = scalar_lea.sflag [#allocation9], %s393_s4  ;;  %s410_s14 = int_to_ptr.vmem [resolvable:$true] %s409_s14 }
  0x69   : > { %p2329_p4 = pnand %p2693_p13, %p127_p5 }
  0x6b   : > { %p1873_p10 = pneg %p2329_p4 }
  0x6c   : > { %s2325_s8 = scalar_lea.hbm %s2692_s2, %s1999_s22  ;;  %s1876_s22 = scalar_lea.hbm %s2692_s2, 256 }
  0x6d   : > { %s1871_s10 = scalar_lea.hbm %s2325_s8, 64 }
  0x6e   : > { %p1872_p8 = scmp.ne.s32.totalorder %s2325_s8, %s1871_s10  ;;  %p1878_p9 = scmp.lt.s32.totalorder %s1876_s22, %s1871_s10 }
  0x70   : > { %p1874_p12 = pnand %p1873_p10, %p1872_p8 }
  0x72   : > { %p1875_p0 = pneg %p1874_p12 }
  0x74   : > { %p1880_p11 = pnand %p1878_p9, %p1875_p0 }
  0x76   : > { %1883 = shalt.err (!%p1880_p11)
}
  0x77   : > { %s1884_s7 = scalar_lea.vmem %s410_s14, 64  ;;  %s2059_s23 = smov [#allocation8]  }
  0x78   : > { %p1885_p7 = scmp.ne.s32.totalorder %s410_s14, %s1884_s7  ;;  %s1889_s29 = sshll.u32 %s2059_s23, 4  ;;  %s1890_s29 = int_to_ptr.vmem [resolvable:$false] %s1889_s29 }
  0x79   : > { %s1891_s4 = scalar_lea.vmem %s1890_s29, 128  ;;  %p1892_p2 = scmp.lt.s32.totalorder %s410_s14, %s1890_s29 }
  0x7a   : > { %p1887_p6 = pnand %p1885_p7, %p1873_p10  ;;  %p1893_p3 = scmp.lt.s32.totalorder %s1891_s4, %s1884_s7 }
  0x7c   : > { %p1888_p1 = pneg %p1887_p6  ;;  %p1894_p5 = por %p1893_p3, %p1892_p2 }
  0x7e   : > { %p1895_p13 = pnand %p1894_p5, %p1888_p1 }
  0x80   : > { %1898 = shalt.err (!%p1895_p13)
}
  0x81   : > { %1669 = dma.hbm_to_vmem [thread:$0]  (!%p2329_p4), %s2325_s8, 64, %s410_s14, %s394_s6  }
  0x82   : > { %p2695_p8 = scmp.ne.s32.totalorder %s2683_s19, 0 }
  0x83   : > { %s420_s3 = sand.u32 (!%p2695_p8), 1, %s2031_s20   ;;  %p2696_p10 = scmp.ne.s32.totalorder (!%p2695_p8), %s2677_s30, 0 }
  0x84   : > { %418 = sbr.rel (%p2695_p8) target bundleno = 1284 (0x504), region = 60  ;;  %s2346_s10 = sshll.u32 (!%p2695_p8), %s420_s3, 2 }
  0x85   : > { %s421_s0 = scalar_lea.sflag (!%p2695_p8), [#allocation6], %s420_s3  ;;  %s424_s5 = scalar_lea.vmem (!%p2695_p8), [#allocation5], %s2346_s10 }
  0x89   : > { %1982 = dma.done.wait (%p2696_p10), %s421_s0, 64  }
  0x8a   : > { %1984 = vsyncadd (%p2696_p10), %s421_s0, 4294967232  ;;  %s429_s8 = sand.u32 1, %s2205_s27   ;;  %s431_s14 = sand.u32 1, %s2019_s17  }
  0x8b   : > { %s2355_s19 = sshll.u32 %s431_s14, 2  ;;  %s430_s12 = scalar_lea.sflag [#allocation9], %s429_s8 }
  0x8c   : > { %p2697_p4 = scmp.ne.s32.totalorder %s2678_s11, 0 }
  0x8e   : > { %1986 = dma.done.wait (%p2697_p4), %s430_s12, 64  }
  0x8f   : > { %1988 = vsyncadd (%p2697_p4), %s430_s12, 4294967232  ;;  %p2698_p12 = scmp.eq.s32.totalorder %s2205_s27, 0 }
  0x91   : > { %1990 = dma.done.wait (%p2698_p12), [#allocation9], 64   ;;  %p2699_p0 = pmov %p2698_p12 }
  0x92   : > { %s2700_s30 = sld [smem:[#allocation17_spill]]  ;;  %vm502_vm0 = vcmask 523268   ;;  %v2060_v0 = vmov 0.0   ;;  %s2061_s6 = smov 32   ;;  %vm509_vm1 = vcmask 1043712   ;;  %vm511_vm2 = vcmask 257024  }
  0x93   : > { %1992 = vsyncadd (%p2699_p0), [#allocation9], 4294967232  ;;  %s2701_s22 = sld [smem:[#allocation19_spill]]  ;;  %501 = vst [vmem:[#allocation2] sm:$0xf0] %v2060_v0 }
  0x94   : > { %s2702_s7 = sld [smem:[#allocation18_spill]]  ;;  %503 = vst.msk [vmem:[#allocation2 + $0x8] sm:$0xf0] %vm502_vm0, %v2060_v0 }
  0x95   : > { %s2703_s14 = sld [smem:[#allocation23_spill]] }
  0x98   : > { %s2660_s23 = sand.u32 1, %s2700_s30  }
  0x99   : > { %p487_p9 = scmp.lt.s32.totalorder %s2701_s22, 1  ;;  %s2372_s11 = sshll.u32 %s2660_s23, 2 }
  0x9a   : > { %p489_p11 = scmp.lt.s32.totalorder %s2702_s7, 1  ;;  %s486_s30 = scalar_lea.vmem [#allocation11], %s2372_s11 }
  0x9b   : > { %s2749_s22 = smov (!%p487_p9, %s2701_s22), 1  ;;  %p1538_p7 = scmp.le.s32.totalorder %s2702_s7, 0 }
  0x9c   : > { %s490_s27 = scalar_select %p489_p11, %s2702_s7, 1 }
  0x9d   : > { %s1536_s29 = sshll.u32 %s2749_s22, 1  ;;  %s2062_s22 = smov (!%p1538_p7), 32  }
  0x9e   : > { %s492_s4 = sadd.s32 %s1536_s29, %s490_s27 }
  0x9f   : > { %s1537_s3 = sshll.u32 %s492_s4, 2 }
  0xa0   : > { %s2380_s12 = scalar_lea.vmem %s2703_s14, %s1537_s3 }
  0xa1   : > { %v504_v1 = vld [vmem:[%s2380_s12] sm:$0xf] }
  0xa2   : > { %506 = vrot.lane.b32.xlu0 %v504_v1, %s2061_s6 }
 0x112   : > { %516 = sbr.rel (%p1538_p7) target bundleno = 396 (0x18c), region = 76 }
 0x114   : > { %v507_v2 = vpop.permute.xlu0 %506 }
 0x115   : > { %510 = vst.msk [vmem:[#allocation2] sm:$0xf] %vm509_vm1, %v507_v2 }
 0x116   : > { %512 = vst.msk [vmem:[#allocation2 + $0x8] sm:$0xf] %vm511_vm2, %v507_v2 }
 0x117   : > { %v517_v3 = vld [vmem:[%s424_s5] sm:$0xf] }
 0x118   : > { %519 = vrot.lane.b32.xlu0 %v517_v3, %s2062_s22 }
 0x18a   : > { %v520_v4 = vpop.permute.xlu0 %519 }
 0x18b   : > { %522 = vst.msk [vmem:[#allocation2] sm:$0xf] %vm511_vm2, %v520_v4 }
 0x18c PF: > { %s2704_s6 = sld [smem:[#allocation18_spill]] }
 0x192   : > { %p1539_p6 = scmp.ne.s32.totalorder %s2704_s6, 0 }
 0x194   : > { %526 = sbr.rel (%p1539_p6) target bundleno = 411 (0x19b), region = 80 }
 0x199   : > { %v2063_v5 = vmov 0.0  }
 0x19a   : > { %527 = vst.msk [vmem:[#allocation2] sm:$0xf] %vm511_vm2, %v2063_v5 }
 0x19b PF: > { %s2705_s27 = sld [smem:[#allocation18_spill]] }
 0x1a1   : > { %p1540_p1 = scmp.ge.s32.totalorder %s2705_s27, 1 }
 0x1a2   : > { %s2706_s7 = scalar_lea.vmem (!%p1540_p1), [#allocation8], %s2355_s19  ;;  %s2064_s10 = smov (!%p1540_p1), 32  }
 0x1a3   : > { %531 = sbr.rel (%p1540_p1) target bundleno = 541 (0x21d), region = 84 }
 0x1a8   : > { %v532_v6 = vld [vmem:[%s2706_s7] sm:$0xf]  ;;  %vm537_vm3 = vcmask 519424  }
 0x1a9   : > { %534 = vrot.lane.b32.xlu0 %v532_v6, %s2064_s10 }
 0x21b   : > { %v535_v7 = vpop.permute.xlu0 %534 }
 0x21c   : > { %538 = vst.msk [vmem:[#allocation2 + $0x8] sm:$0xf] %vm537_vm3, %v535_v7 }
 0x21d PF: > { %s2707_s5 = sld [smem:[#allocation18_spill]] }
 0x223   : > { %p1541_p2 = scmp.ne.s32.totalorder %s2707_s5, 1 }
 0x225   : > { %542 = sbr.rel (%p1541_p2) target bundleno = 556 (0x22c), region = 88 }
 0x22a   : > { %vm543_vm4 = vcmask 519424   ;;  %v2065_v8 = vmov 0.0  }
 0x22b   : > { %544 = vst.msk [vmem:[#allocation2 + $0x8] sm:$0xf] %vm543_vm4, %v2065_v8 }
 0x22c PF: > { %1587 = vmatprep.subr.mxu0 %v2060_v0  ;;  %1592 = vmatprep.subr.mxu1 %v2060_v0  ;;  %s2066_s19 = smov 66   ;;  %s2067_s29 = smov 2   ;;  %v2397_v10 = vld [vmem:[#allocation2] sm:$0xff]  ;;  %v624_v11 = vlaneseq  ;;  %vm617_vm5 = vcmask 15360   ;;  %vm602_vm6 = vcmask 523264   ;;  %vm673_vm7 = vcmask 7168  }
 0x22d   : > { %s2068_s4 = smov 65   ;;  %s2069_s3 = smov 1   ;;  %vm736_vm8 = vcmask 1039360   ;;  %vm743_vm9 = vcmask 515072   ;;  %vm803_vm10 = vcmask 1031168   ;;  %vm810_vm11 = vcmask 506880  }
 0x22e   : > { %s2070_s0 = smov 127   ;;  %s2071_s8 = smov 63   ;;  %v625_v12 = vshrl.u32 %v624_v11, 7  ;;  %vm565_vm12 = vcmask 785408   ;;  %vm2078_vm13 = vmmov 0   ;;  %vm880_vm14 = vcmask 64512  }
 0x22f   : > { %s2072_s14 = smov 126   ;;  %s2073_s22 = smov 62   ;;  %1589 = vmatprep.mubr.msk.f32.mxu0 %vm2078_vm13, %v2060_v0  ;;  %1610 = vmatprep.mubr.msk.f32.mxu1 %vm2078_vm13, %v2060_v0  ;;  %v2079_v1 = vmov 0   ;;  %vm577_vm15 = vcmask 654336   ;;  %vm553_vm0 = vcmask 916480   ;;  %vm961_vm1 = vcmask 588800  }
 0x230   : > { %s2074_s6 = smov 96   ;;  %s2075_s27 = smov 80   ;;  %v626_v13 = vsub.s32 0, %v625_v12  ;;  %v2420_v14 = vsub.s32 1, %v625_v12  ;;  %1814 = vset.pattern.permute.xlu1 %v2079_v1  ;;  %1813 = vset.pattern.permute.xlu0 %v2079_v1  ;;  %vm1123_vm2 = vcmask 1043456   ;;  %vm1120_vm3 = vcmask 31744  }
 0x231   : > { %s2076_s7 = smov 64   ;;  %s2077_s10 = smov 112  }
 0x232   : > { %v607_v9 = vld [vmem:[#allocation2 + $0x8] sm:$0xff]  ;;  %s2716_s5 = sld [smem:[#allocation17_spill]] }
 0x233   : > { %609 = vrot.lane.b32.xlu0 %v607_v9, %s2066_s19  ;;  %615 = vrot.lane.b32.xlu1 %v607_v9, %s2067_s29  ;;  %s2717_s19 = sld [smem:[#allocation20_spill]] }
 0x237   : > { %613 = vrot.lane.b32.xlu0 %v2397_v10, %s2067_s29  ;;  %665 = vrot.lane.b32.xlu1 %v607_v9, %s2068_s4  ;;  %s2708_s29 = sld [smem:[#allocation26_spill]] }
 0x238   : > { %s2709_s4 = sld [smem:[#allocation27_spill]] }
 0x239   : > { %p2720_p5 = scmp.ne.s32.totalorder %s2717_s19, 0 }
 0x23b   : > { %669 = vrot.lane.b32.xlu0 %v2397_v10, %s2069_s3  ;;  %671 = vrot.lane.b32.xlu1 %v607_v9, %s2069_s3 }
 0x23d   : > { %v622_v15 = vld [vmem:[%s2708_s29] ss:$4 sm:$0x3]  ;;  %v1542_v20 = vld [vmem:[%s2708_s29 + $0x1] ss:$4 sm:$0x3] }
 0x23e   : > { %v627_v18 = vrot.slane %v622_v15, %v626_v13  ;;  %v631_v19 = vrot.slane %v622_v15, %v2420_v14  ;;  %v684_v27 = vrot.slane %v1542_v20, %v626_v13  ;;  %v688_v29 = vrot.slane %v1542_v20, %v2420_v14  ;;  %v1543_v33 = vld [vmem:[%s2708_s29 + $0x2] ss:$4 sm:$0x3]  ;;  %v1544_v41 = vld [vmem:[%s2708_s29 + $0x3] ss:$4 sm:$0x3] }
 0x23f   : > { %734 = vrot.lane.b32.xlu1 %v607_v9, %s2070_s0  ;;  %732 = vrot.lane.b32.xlu0 %v2397_v10, %s2070_s0  ;;  %v751_v37 = vrot.slane %v1543_v33, %v626_v13  ;;  %v755_v43 = vrot.slane %v1543_v33, %v2420_v14  ;;  %v818_v47 = vrot.slane %v1544_v41, %v626_v13  ;;  %v854_v60 = vld [vmem:[%s2709_s4] sm:$0xf]  ;;  %s2710_s0 = sld [smem:[#allocation30_spill]] }
 0x240   : > { %v822_v54 = vrot.slane %v1544_v41, %v2420_v14  ;;  %s2712_s4 = sld [smem:[#allocation32_spill]] }
 0x243   : > { %740 = vrot.lane.b32.xlu0 %v2397_v10, %s2071_s8  ;;  %799 = vrot.lane.b32.xlu1 %v2397_v10, %s2072_s14  ;;  %s2081_s8 = smov 120  }
 0x245   : > { %v955_v63 = vld [vmem:[%s2710_s0 + $0x4] sm:$0xf]  ;;  %v874_v4 = vld [vmem:[%s2710_s0] sm:$0xf]  ;;  %v1036_v5 = vld [vmem:[%s2710_s0 + $0x8] sm:$0xf] }
 0x246   : > { %v1350_v3 = vld [vmem:[%s2712_s4] sm:$0xf]  ;;  %s2719_s0 = sand.u32 1, %s2716_s5  }
 0x247   : > { %801 = vrot.lane.b32.xlu0 %v607_v9, %s2072_s14  ;;  %807 = vrot.lane.b32.xlu1 %v2397_v10, %s2073_s22  ;;  %s2711_s22 = sld [smem:[#allocation31_spill]]  ;;  %s1365_s1 = scalar_lea.sflag [#allocation7], %s2719_s0 }
 0x248   : > { %s2713_s14 = sld [smem:[#allocation29_spill]] }
 0x24b   : > { %563 = vrot.lane.b32.xlu1 %v607_v9, %s2074_s6  ;;  %561 = vrot.lane.b32.xlu0 %v2397_v10, %s2074_s6 }
 0x24d   : > { %v2489_v2 = vld [vmem:[%s2711_s22] sm:$0xf]  ;;  %s2714_s22 = sld [smem:[#allocation19_spill]] }
 0x24f   : > { %575 = vrot.lane.b32.xlu1 %v607_v9, %s2075_s27  ;;  %573 = vrot.lane.b32.xlu0 %v2397_v10, %s2075_s27 }
 0x253   : > { %600 = vrot.lane.b32.xlu1 %v607_v9, %s2076_s7  ;;  %598 = vrot.lane.b32.xlu0 %v2397_v10, %s2076_s7  ;;  %s1555_s4 = sshll.u32 %s2714_s22, 1 }
 0x257   : > { %589 = vrot.lane.b32.xlu1 %v607_v9, %s2074_s6  ;;  %587 = vrot.lane.b32.xlu0 %v2397_v10, %s2074_s6 }
 0x25b   : > { %551 = vrot.lane.b32.xlu1 %v607_v9, %s2077_s10  ;;  %549 = vrot.lane.b32.xlu0 %v2397_v10, %s2077_s10 }
 0x2a5   : > { %v610_v16 = vpop.permute.xlu0 %609  ;;  %v616_v17 = vpop.permute.xlu1 %615 }
 0x2a9   : > { %v614_v21 = vpop.permute.xlu0 %613  ;;  %v666_v22 = vpop.permute.xlu1 %665 }
 0x2aa   : > { %v618_v23 = vsel %vm617_vm5, %v614_v21, %v616_v17  ;;  %v621_v24 = vsel %vm617_vm5, %v610_v16, %v614_v21 }
 0x2ab   : > { %v2429_v25 = vmul.f32 %v627_v18, %v621_v24  ;;  %v635_v26 = vmul.f32 %v631_v19, %v618_v23 }
 0x2ad   : > { %637 = vst.msk [vmem:[#allocation3 + $0x8] sm:$0xff] %vm602_vm6, %v635_v26  ;;  %v670_v28 = vpop.permute.xlu0 %669  ;;  %v672_v30 = vpop.permute.xlu1 %671  ;;  %655 = vrot.lane.b32.xlu0 %v2429_v25, %s2076_s7 }
 0x2ae   : > { %v677_v31 = vsel %vm673_vm7, %v666_v22, %v670_v28  ;;  %v674_v32 = vsel %vm673_vm7, %v670_v28, %v672_v30 }
 0x2af   : > { %v691_v34 = vmul.f32 %v684_v27, %v677_v31  ;;  %v692_v35 = vmul.f32 %v688_v29, %v674_v32 }
 0x2b1   : > { %v735_v36 = vpop.permute.xlu1 %734  ;;  %v733_v38 = vpop.permute.xlu0 %732  ;;  %721 = vrot.lane.b32.xlu0 %v691_v34, %s2075_s27 }
 0x2b2   : > { %v737_v39 = vsel %vm736_vm8, %v733_v38, %v735_v36 }
 0x2b3   : > { %v758_v42 = vmul.f32 %v751_v37, %v737_v39 }
 0x2b4   : > { %v641_v40 = vld [vmem:[#allocation3 + $0x8] sm:$0xff] }
 0x2b5   : > { %694 = vst.msk [vmem:[#allocation3 + $0x8] sm:$0xff] %vm602_vm6, %v692_v35  ;;  %657 = vrot.lane.b32.xlu1 %v641_v40, %s2076_s7  ;;  %v741_v44 = vpop.permute.xlu0 %740  ;;  %v800_v45 = vpop.permute.xlu1 %799  ;;  %710 = vrot.lane.b32.xlu0 %v691_v34, %s2074_s6 }
 0x2b6   : > { %v744_v46 = vsel %vm743_vm9, %v735_v36, %v741_v44 }
 0x2b7   : > { %v759_v48 = vmul.f32 %v755_v43, %v744_v46 }
 0x2b9   : > { %v802_v49 = vpop.permute.xlu0 %801  ;;  %v808_v50 = vpop.permute.xlu1 %807  ;;  %788 = vrot.lane.b32.xlu0 %v758_v42, %s2075_s27 }
 0x2ba   : > { %v804_v51 = vsel %vm803_vm10, %v800_v45, %v802_v49  ;;  %v811_v57 = vsel %vm810_vm11, %v802_v49, %v808_v50  ;;  %v855_v49 = vld [vmem:[#allocation10] sm:$0xf] }
 0x2bb   : > { %v2447_v52 = vmul.f32 %v818_v47, %v804_v51  ;;  %v826_v59 = vmul.f32 %v822_v54, %v811_v57  ;;  %v864_v51 = vld [vmem:[%s2713_s14] sm:$0xf] }
 0x2bc   : > { %v718_v53 = vld [vmem:[#allocation3 + $0x8] sm:$0xff] }
 0x2bd   : > { %723 = vrot.lane.b32.xlu1 %v718_v53, %s2075_s27  ;;  %761 = vst.msk [vmem:[#allocation3 + $0x8] sm:$0xff] %vm602_vm6, %v759_v48  ;;  %777 = vrot.lane.b32.xlu0 %v758_v42, %s2074_s6  ;;  %v564_v55 = vpop.permute.xlu1 %563  ;;  %v562_v56 = vpop.permute.xlu0 %561 }
 0x2be   : > { %v2454_v58 = vsel %vm565_vm12, %v562_v56, %v564_v55 }
 0x2bf   : > { %1588 = vmatpush3.msra.mxu0 %v2454_v58 }
 0x2c0   : > { %1613 = vmatprep.subr.mxu0 %v2060_v0  ;;  %1590 = vmatmul.mubr.msk.f32.vlgmr.msra.gmra.mxu0 %vm880_vm14, %v854_v60 }
 0x2c1   : > { %712 = vrot.lane.b32.xlu1 %v718_v53, %s2074_s6  ;;  %766 = vrot.lane.b32.xlu0 %v758_v42, %s2077_s10  ;;  %v574_v6 = vpop.permute.xlu0 %573  ;;  %v576_v8 = vpop.permute.xlu1 %575 }
 0x2c2   : > { %1631 = vmatprep.mubr.msk.f32.mxu0 %vm2078_vm13, %v2060_v0  ;;  %v578_v27 = vsel %vm577_vm15, %v574_v6, %v576_v8 }
 0x2c4   : > { %v785_v61 = vld [vmem:[#allocation3 + $0x8] sm:$0xff] }
 0x2c5   : > { %790 = vrot.lane.b32.xlu1 %v785_v61, %s2075_s27  ;;  %828 = vst.msk [vmem:[#allocation3 + $0x8] sm:$0xff] %vm602_vm6, %v826_v59  ;;  %846 = vrot.lane.b32.xlu0 %v2447_v52, %s2076_s7  ;;  %v599_v7 = vpop.permute.xlu0 %598  ;;  %v601_v11 = vpop.permute.xlu1 %600 }
 0x2c6   : > { %v603_v38 = vsel %vm602_vm6, %v599_v7, %v601_v11 }
 0x2c9   : > { %779 = vrot.lane.b32.xlu1 %v785_v61, %s2074_s6  ;;  %835 = vrot.lane.b32.xlu0 %v2447_v52, %s2074_s6  ;;  %v588_v9 = vpop.permute.xlu0 %587  ;;  %v590_v13 = vpop.permute.xlu1 %589 }
 0x2ca   : > { %v591_v45 = vsel %vm565_vm12, %v588_v9, %v590_v13 }
 0x2cc   : > { %v843_v62 = vld [vmem:[#allocation3 + $0x8] sm:$0xff] }
 0x2cd   : > { %768 = vrot.lane.b32.xlu1 %v785_v61, %s2077_s10  ;;  %644 = vrot.lane.b32.xlu0 %v2429_v25, %s2074_s6  ;;  %v550_v12 = vpop.permute.xlu0 %549  ;;  %v552_v16 = vpop.permute.xlu1 %551 }
 0x2ce   : > { %v554_v39 = vsel %vm553_vm0, %v550_v12, %v552_v16 }
 0x2d1   : > { %848 = vrot.lane.b32.xlu1 %v843_v62, %s2076_s7  ;;  %699 = vrot.lane.b32.xlu0 %v691_v34, %s2077_s10  ;;  %s2080_s7 = smov 124  }
 0x2d5   : > { %837 = vrot.lane.b32.xlu1 %v843_v62, %s2074_s6  ;;  %958 = vperm.xlu0 %1813, %v955_v63  }
 0x2d9   : > { %646 = vrot.lane.b32.xlu1 %v641_v40, %s2074_s6  ;;  %1118 = vrot.lane.b32.xlu0 %v2489_v2, %s2080_s7  ;;  %s2715_s7 = sld [smem:[#allocation18_spill]]  ;;  %s1380_s6 = sshll.u32 %s486_s30, 4  ;;  %s1381_s6 = int_to_ptr.vmem [resolvable:$true] %s1380_s6 }
 0x2da   : > { %s1899_s2 = scalar_lea.vmem %s1381_s6, 64 }
 0x2db   : > { %p1900_p3 = scmp.ne.s32.totalorder %s1381_s6, %s1899_s2 }
 0x2dd   : > { %701 = vrot.lane.b32.xlu1 %v718_v53, %s2077_s10  ;;  %1353 = vperm.xlu0 %1813, %v1350_v3   ;;  %s2718_s10 = sld [smem:[#allocation33_spill]]  ;;  %p1901_p13 = pnand %p1900_p3, %p2720_p5 }
 0x2df   : > { %s1376_s27 = sadd.s32 %s2715_s7, %s1555_s4  ;;  %p1902_p8 = pneg %p1901_p13 }
 0x2e0   : > { %s1556_s3 = sshll.u32 %s1376_s27, 6 }
 0x2e1   : > { %877 = vperm.xlu1 %1814, %v874_v4  }
 0x2e3   : > { %s1378_s14 = scalar_lea.hbm %s2718_s10, %s1556_s3 }
 0x2e5   : > { %1039 = vperm.xlu1 %1814, %v1036_v5  }
 0x2e9   : > { %1272 = vrot.lane.b32.xlu1 %v2489_v2, %s2081_s8 }
 0x31f   : > { %v656_v14 = vpop.permute.xlu0 %655 }
 0x323   : > { %v722_v15 = vpop.permute.xlu0 %721 }
 0x327   : > { %v711_v17 = vpop.permute.xlu0 %710  ;;  %v658_v18 = vpop.permute.xlu1 %657 }
 0x328   : > { %v659_v41 = vsel %vm602_vm6, %v656_v14, %v658_v18 }
 0x32b   : > { %v789_v19 = vpop.permute.xlu0 %788 }
 0x32f   : > { %v724_v20 = vpop.permute.xlu1 %723  ;;  %v778_v21 = vpop.permute.xlu0 %777 }
 0x330   : > { %v725_v29 = vsel %vm577_vm15, %v722_v15, %v724_v20 }
 0x333   : > { %v713_v22 = vpop.permute.xlu1 %712  ;;  %v767_v24 = vpop.permute.xlu0 %766 }
 0x334   : > { %v714_v33 = vsel %vm565_vm12, %v711_v17, %v713_v22  ;;  %v1361_v17 = vld [vmem:[%s2380_s12] sm:$0xf]  ;;  %s2082_s12 = smov [#allocation11]  }
 0x335   : > { %s1903_s22 = sshll.u32 %s2082_s12, 4  ;;  %s1904_s22 = int_to_ptr.vmem [resolvable:$false] %s1903_s22 }
 0x336   : > { %s1905_s7 = scalar_lea.vmem %s1904_s22, 128  ;;  %p1906_p10 = scmp.lt.s32.totalorder %s1381_s6, %s1904_s22 }
 0x337   : > { %v791_v23 = vpop.permute.xlu1 %790  ;;  %v847_v30 = vpop.permute.xlu0 %846  ;;  %p1907_p4 = scmp.lt.s32.totalorder %s1905_s7, %s1899_s2 }
 0x338   : > { %v792_v26 = vsel %vm577_vm15, %v789_v19, %v791_v23 }
 0x339   : > { %1593 = vmatpush3.msra.mxu1 %v792_v26  ;;  %p1908_p12 = por %p1907_p4, %p1906_p10 }
 0x33a   : > { %1594 = vmatprep.subr.mxu1 %v2060_v0 }
 0x33b   : > { %v780_v28 = vpop.permute.xlu1 %779  ;;  %1595 = vmatpush3.msra.mxu1 %v578_v27  ;;  %v836_v35 = vpop.permute.xlu0 %835  ;;  %p1909_p0 = pnand %p1908_p12, %p1902_p8 }
 0x33c   : > { %1596 = vmatprep.subr.mxu1 %v2060_v0  ;;  %v781_v31 = vsel %vm565_vm12, %v778_v21, %v780_v28 }
 0x33d   : > { %1597 = vmatpush3.msra.mxu1 %v725_v29 }
 0x33e   : > { %1598 = vmatprep.subr.mxu1 %v2060_v0 }
 0x33f   : > { %v769_v32 = vpop.permute.xlu1 %768  ;;  %1599 = vmatpush3.msra.mxu1 %v781_v31  ;;  %v645_v42 = vpop.permute.xlu0 %644 }
 0x340   : > { %1600 = vmatprep.subr.mxu1 %v2060_v0  ;;  %v770_v37 = vsel %vm553_vm0, %v767_v24, %v769_v32 }
 0x341   : > { %1601 = vmatpush3.msra.mxu1 %v2454_v58 }
 0x342   : > { %1602 = vmatprep.subr.mxu1 %v2060_v0 }
 0x343   : > { %v849_v34 = vpop.permute.xlu1 %848  ;;  %1603 = vmatpush3.msra.mxu1 %v714_v33  ;;  %v700_v48 = vpop.permute.xlu0 %699 }
 0x344   : > { %v850_v36 = vsel %vm602_vm6, %v847_v30, %v849_v34  ;;  %1604 = vmatprep.subr.mxu1 %v2060_v0 }
 0x345   : > { %1605 = vmatpush3.msra.mxu1 %v770_v37  ;;  %1614 = vmatpush3.msra.mxu0 %v850_v36 }
 0x346   : > { %1606 = vmatprep.subr.mxu1 %v2060_v0  ;;  %1615 = vmatprep.subr.mxu0 %v2060_v0 }
 0x347   : > { %v838_v40 = vpop.permute.xlu1 %837  ;;  %1607 = vmatpush3.msra.mxu1 %v554_v39  ;;  %1616 = vmatpush3.msra.mxu0 %v603_v38 }
 0x348   : > { %1617 = vmatprep.subr.mxu0 %v2060_v0  ;;  %1608 = vmatprep.subr.mxu1 %v2060_v0  ;;  %v839_v43 = vsel %vm565_vm12, %v836_v35, %v838_v40 }
 0x349   : > { %1618 = vmatpush3.msra.mxu0 %v659_v41 }
 0x34a   : > { %1619 = vmatprep.subr.mxu0 %v2060_v0 }
 0x34b   : > { %v647_v44 = vpop.permute.xlu1 %646  ;;  %1620 = vmatpush3.msra.mxu0 %v839_v43 }
 0x34c   : > { %1621 = vmatprep.subr.mxu0 %v2060_v0  ;;  %v648_v46 = vsel %vm565_vm12, %v645_v42, %v647_v44 }
 0x34d   : > { %1622 = vmatpush3.msra.mxu0 %v591_v45 }
 0x34e   : > { %1623 = vmatprep.subr.mxu0 %v2060_v0 }
 0x34f   : > { %v702_v47 = vpop.permute.xlu1 %701  ;;  %1624 = vmatpush3.msra.mxu0 %v648_v46 }
 0x350   : > { %1625 = vmatprep.subr.mxu0 %v2060_v0  ;;  %v703_v50 = vsel %vm553_vm0, %v700_v48, %v702_v47  ;;  %v959_v56 = vpop.permute.xlu0 %958 }
 0x351   : > { %1609 = vmatpush3.msra.mxu1 %v703_v50  ;;  %1626 = vmatpush3.msra.mxu0 %v2447_v52 }
 0x352   : > { %1611 = vmatmul.mubr.msk.f32.vlgmr.msra.gmra.mxu1 %vm961_vm1, %v855_v49  ;;  %1627 = vmatprep.subr.mxu0 %v2060_v0 }
 0x353   : > { %1628 = vmatpush3.msra.mxu0 %v2397_v10  ;;  %1634 = vmatprep.subr.mxu1 %v2060_v0 }
 0x354   : > { %1629 = vmatprep.subr.mxu0 %v2060_v0  ;;  %1636 = vmatprep.mubr.msk.f32.mxu1 %vm2078_vm13, %v2060_v0  ;;  %v1119_v62 = vpop.permute.xlu0 %1118 }
 0x355   : > { %1630 = vmatpush3.msra.mxu0 %v2429_v25 }
 0x356   : > { %1632 = vmatmul.mubr.msk.f32.vlgmr.msra.gmra.mxu0 %vm961_vm1, %v864_v51  ;;  %1639 = vmatprep.subr.mxu0 %v2060_v0 }
 0x357   : > { %1641 = vmatprep.mubr.msk.f32.mxu0 %vm2078_vm13, %v2060_v0 }
 0x358   : > { %v1354_v12 = vpop.permute.xlu0 %1353 }
 0x35c   : > { %v878_v10 = vpop.permute.xlu1 %877 }
 0x360   : > { %v1040_v59 = vpop.permute.xlu1 %1039 }
 0x364   : > { %v1273_v4 = vpop.permute.xlu1 %1272 }
 0x380   : > { %v950_v52 = vpop.f32.mrf.mxu0 }
 0x381   : > { %v951_v53 = vadd.f32 %v950_v52, %v878_v10 }
 0x382   : > { %v1591_v54 = vpop.f32.mrf.mxu0 }
 0x383   : > { %v954_v55 = vmax.f32 %v951_v53, 0.0 }
 0x385   : > { %1640 = vmatpush3.msk.msra.mxu0 %vm1123_vm2, %v954_v55 }
 0x386   : > { %1642 = vmatmul.mubr.msk.f32.vlgmr.msra.gmra.mxu0 %vm1120_vm3, %v2489_v2 }
 0x412   : > { %v1031_v25 = vpop.f32.mrf.mxu1 }
 0x413   : > { %v1032_v57 = vadd.f32 %v1031_v25, %v959_v56 }
 0x414   : > { %v1612_v58 = vpop.f32.mrf.mxu1 }
 0x415   : > { %v1035_v60 = vmax.f32 %v1032_v57, 0.0 }
 0x416   : > { %v1111_v61 = vpop.f32.mrf.mxu0 }
 0x417   : > { %v1112_v63 = vadd.f32 %v1111_v61, %v1040_v59  ;;  %1635 = vmatpush3.msk.msra.mxu1 %vm1123_vm2, %v1035_v60 }
 0x418   : > { %v1633_v1 = vpop.f32.mrf.mxu0  ;;  %1637 = vmatmul.mubr.msk.f32.vlgmr.msra.gmra.mxu1 %vm1120_vm3, %v1119_v62  ;;  %1644 = vmatprep.subr.mxu1 %v2060_v0 }
 0x419   : > { %v1115_v3 = vmax.f32 %v1112_v63, 0.0  ;;  %1646 = vmatprep.mubr.msk.f32.mxu1 %vm2078_vm13, %v2060_v0 }
 0x41b   : > { %1645 = vmatpush3.msk.msra.mxu1 %vm1123_vm2, %v1115_v3 }
 0x41c   : > { %1647 = vmatmul.mubr.msk.f32.vlgmr.msra.gmra.mxu1 %vm1120_vm3, %v1273_v4 }
 0x446   : > { %v1268_v2 = vpop.f32.mrf.mxu0 }
 0x448   : > { %v1643_v5 = vpop.f32.mrf.mxu0 }
 0x4d8   : > { %v1193_v6 = vpop.f32.mrf.mxu1 }
 0x4d9   : > { %v1269_v8 = vadd.f32 %v1268_v2, %v1193_v6 }
 0x4da   : > { %v1638_v7 = vpop.f32.mrf.mxu1 }
 0x4dc   : > { %v1345_v9 = vpop.f32.mrf.mxu1 }
 0x4dd   : > { %v1349_v11 = vadd.f32 %v1345_v9, %v1269_v8 }
 0x4de   : > { %v1648_v13 = vpop.f32.mrf.mxu1 }
 0x4df   : > { %v1356_v14 = vadd.f32 %v1354_v12, %v1349_v11 }
 0x4e1   : > { %v1357_v0 = vmul.f32 0.5, %v1356_v14 }
 0x4e3   : > { %1815 = vtanh.f32 %v1357_v0 }
 0x4f0   : > { %v1816_v15 = vpop.eup %1815 }
 0x4f1   : > { %v1359_v16 = vmul.f32 0.5, %v1816_v15 }
 0x4f3   : > { %v1360_v18 = vadd.f32 1.5, %v1359_v16 }
 0x4f5   : > { %v1362_v19 = vmul.f32 %v1361_v17, %v1360_v18 }
 0x4f7   : > { %1363 = vst [vmem:[%s486_s30] sm:$0xf] %v1362_v19 }
 0x4f8   : > { %1912 = shalt.err (!%p1909_p0)
}
 0x4f9   : > { %s1913_s4 = scalar_lea.hbm %s1378_s14, 64  ;;  %s1917_s0 = scalar_lea.hbm %s2718_s10, 256 }
 0x4fa   : > { %p1914_p9 = scmp.ne.s32.totalorder %s1378_s14, %s1913_s4  ;;  %p1918_p6 = scmp.lt.s32.totalorder %s1378_s14, %s2718_s10 }
 0x4fb   : > { %p1919_p1 = scmp.lt.s32.totalorder %s1917_s0, %s1913_s4 }
 0x4fc   : > { %p1915_p11 = pnand %p1914_p9, %p2720_p5 }
 0x4fd   : > { %p1920_p2 = por %p1919_p1, %p1918_p6 }
 0x4fe   : > { %p1916_p7 = pneg %p1915_p11 }
 0x500   : > { %p1921_p3 = pnand %p1920_p2, %p1916_p7 }
 0x502   : > { %1924 = shalt.err (!%p1921_p3)
}
 0x503   : > { %1657 = dma.vmem_to_hbm [thread:$0]  (%p2720_p5), %s1381_s6, 64, %s1378_s14, %s1365_s1  }
 0x504 PF: > { %s2721_s2 = sld [smem:[#allocation16_spill]]  ;;  %p1677_p13 = scmp.ge.s32.totalorder %s2055_s26, 2 }
 0x505   : > { %s2722_s3 = sld [smem:[#allocation21_spill]] }
 0x50a   : > { %s1392_s8 = sand.u32 1, %s2721_s2  }
 0x50b   : > { %p2723_p8 = scmp.ne.s32.totalorder %s2722_s3, 0  ;;  %s1393_s23 = scalar_lea.sflag [#allocation7], %s1392_s8 }
 0x50d   : > { %p1671_p10 = pnand %p1677_p13, %p2723_p8 }
 0x50f   : > { %p1672_p4 = pneg %p1671_p10 }
 0x511   : > { %1994 = dma.done.wait (%p1672_p4), %s1393_s23, 64  }
 0x512   : > { %1996 = vsyncadd (%p1672_p4), %s1393_s23, 4294967232  ;;  %s29_s26 = sadd.s32 1, %s2055_s26   ;;  %s2725_s19 = sld [smem:[#allocation17_spill]] }
 0x513   : > { %p2582_p12 = scmp.ge.s32.totalorder %s29_s26, 6   ;;  %s2726_s1 = smov %s2314_s13 }
 0x514   : > { %s2727_s6 = smov %s2275_s16  ;;  %s2728_s7 = sld [smem:[#allocation22_spill]] }
 0x515   : > { %s2730_s14 = smov %s2011_s15  ;;  %s2731_s15 = smov %s2284_s9 }
 0x516   : > { %s2732_s16 = smov %s2019_s17  ;;  %s2733_s17 = smov %s2023_s18 }
 0x517   : > { %s2734_s18 = smov %s2726_s1  ;;  %s2738_s22 = smov %s2047_s24 }
 0x518   : > { %s2729_s13 = smov %s2725_s19  ;;  %s2735_s19 = smov %s2031_s20 }
 0x519   : > { %s2736_s20 = smov %s2035_s21  ;;  %s2737_s21 = smov %s2727_s6 }
 0x51a   : > { %s2739_s23 = smov %s2051_s25  ;;  %s2740_s24 = smov %s2743_s28 }
 0x51b   : > { %s2741_s25 = smov %s2728_s7  ;;  %28 = sbr.rel (!%p2582_p12) target bundleno = 24 (0x18), region = 144 }
 0x520   :  { %1398 = vsyncpa [#allocation6], 1 }
 0x521   :  { %1400 = vsyncpa [#allocation6 + $0x1], 1 }
 0x522   :  { %1401 = vsyncpa [#allocation9], 1 }
 0x523   :  { %1403 = vsyncpa [#allocation9 + $0x1], 1 }
 0x524   :  { %1404 = vsyncpa [#allocation7], 1 }
 0x525   :  { %1406 = vsyncpa [#allocation7 + $0x1], 1 }

</bundles_post_ra>
